<compile_context>
chip_gen: v6e
topology: v6e:2x2x1
jax: 0.10.0
libtpu: 0.0.40
codegen_flags: <defaults>
</compile_context>

<pallas_src>
import functools
import math

import jax
import jax.numpy as jnp
from jax.experimental import pallas as pl
from jax.experimental.pallas import tpu as pltpu


_LANE = 128
_VMEM_BUDGET = 28 * 1024 * 1024      # target for all (double-buffered) tiles
_VMEM_LIMIT = 48 * 1024 * 1024       # scoped VMEM limit handed to Mosaic
_W_RESIDENT_BYTES = 6 * 1024 * 1024  # keep the whole weight resident below this
_K_SPLIT_BYTES = 4 * 1024 * 1024     # K-tile the GEMM above this weight panel


def _round_up(x, m):
    return ((x + m - 1) // m) * m


# ----------------------------------------------------------------------------
# Kernels
# ----------------------------------------------------------------------------
def _make_fused_kernel(nf, has_res):
    """out = ReLU(sum_i x_i @ w_i + bias) [+ residual]  (no K grid axis)."""

    def kernel(*refs):
        x_refs = refs[:nf]
        w_refs = refs[nf:2 * nf]
        b_ref = refs[2 * nf]
        if has_res:
            r_ref = refs[2 * nf + 1]
            o_ref = refs[2 * nf + 2]
        else:
            o_ref = refs[2 * nf + 1]
        acc = jnp.dot(x_refs[0][...], w_refs[0][...],
                      preferred_element_type=jnp.float32)
        for i in range(1, nf):
            acc = acc + jnp.dot(x_refs[i][...], w_refs[i][...],
                                preferred_element_type=jnp.float32)
        y = jnp.maximum(acc + b_ref[...], 0.0)
        if has_res:
            y = y + r_ref[...].astype(jnp.float32)
        o_ref[...] = y.astype(o_ref.dtype)

    return kernel


def _make_ktiled_kernel(has_res):
    """Same epilogue, with a K reduction grid axis and an f32 accumulator."""

    def kernel(*refs):
        if has_res:
            x_ref, w_ref, b_ref, r_ref, o_ref, acc_ref = refs
        else:
            x_ref, w_ref, b_ref, o_ref, acc_ref = refs

        @pl.when(pl.program_id(2) == 0)
        def _init():
            acc_ref[...] = jnp.zeros_like(acc_ref)

        acc_ref[...] += jnp.dot(x_ref[...], w_ref[...],
                                preferred_element_type=jnp.float32)

        @pl.when(pl.program_id(2) == pl.num_programs(2) - 1)
        def _finalize():
            y = jnp.maximum(acc_ref[...] + b_ref[...], 0.0)
            if has_res:
                y = y + r_ref[...].astype(jnp.float32)
            o_ref[...] = y.astype(o_ref.dtype)

    return kernel


# ----------------------------------------------------------------------------
# Tiling heuristics (VMEM budget incl. weights, residual, double buffering)
# ----------------------------------------------------------------------------
def _pick_tn(n_pad, k_total, bytes_per=2):
    # Prefer gn == 1 so the (bf16) weight panel is DMA'd once and stays
    # resident in VMEM across all row tiles.
    if k_total * n_pad * bytes_per <= _W_RESIDENT_BYTES:
        return n_pad
    for tn in (512, 256, 128):
        if n_pad % tn == 0 and k_total * tn * bytes_per <= _W_RESIDENT_BYTES:
            return tn
    return _LANE


def _pick_tm(m, row_bytes, fixed_bytes):
    avail = max(_VMEM_BUDGET - fixed_bytes, 16 * row_bytes)
    max_rows = max((avail // (2 * row_bytes)) // 8 * 8, 8)
    # keep >= 2 row tiles so the "parallel" row axis can shard across the two
    # v7x TensorCores (no effect on v5e/v6e correctness).
    cap = max(m // 2, 8) if m >= 16 else 8
    cands = [t for t in (1024, 512, 256, 128, 64, 32, 16, 8)
             if t <= min(cap, max_rows)]
    if not cands:
        cands = [8]
    for t in cands:                       # prefer a tile that divides M exactly
        if m % t == 0:
            return t, m
    t = cands[0]
    return t, _round_up(m, t)


def _pick_tk(k, tn, force_tk):
    if force_tk is not None:
        tk = int(force_tk)
        assert k % tk == 0 and tk % _LANE == 0
        return tk if tk < k else None
    if k % _LANE != 0 or k * tn * 2 <= _K_SPLIT_BYTES:
        return None
    for tk in (2048, 1024, 512, 256, 128):
        if k % tk == 0 and tk * tn * 2 <= 2 * 1024 * 1024:
            return tk
    return _LANE


# ----------------------------------------------------------------------------
# Fused  ReLU(sum_i x_i @ w_i + bias) [+ residual]  wrapper
# ----------------------------------------------------------------------------
def fused_matmul_bias_relu(xs, ws, bias, *, residual=None,
                           out_dtype=jnp.float32, force_tk=None):
    """xs[i]: (M, C_i), ws[i]: (C_i, N) (BN scale pre-folded), bias: (N,).

    GEMMs run in bf16 on the MXU with f32 accumulation; the bias/ReLU/residual
    epilogue stays in f32 and only the final store is cast to out_dtype.
    """
    nf = len(xs)
    m = int(xs[0].shape[0])
    n = int(ws[0].shape[1])
    cs = [int(x.shape[1]) for x in xs]
    assert len(ws) == nf
    for x, w, c in zip(xs, ws, cs):
        assert int(x.shape[0]) == m and int(w.shape[0]) == c and int(w.shape[1]) == n

    n_pad = _round_up(n, _LANE)           # lane-dense (unmasked) output stores
    k_total = sum(cs)
    out_bytes = jnp.dtype(out_dtype).itemsize

    # bf16 GEMM operands; f32 epilogue params.
    xs_b = [x.astype(jnp.bfloat16) for x in xs]
    ws_b = [jnp.pad(w.astype(jnp.float32), ((0, 0), (0, n_pad - n)))
            .astype(jnp.bfloat16) for w in ws]
    bias_p = jnp.pad(bias.reshape(1, n).astype(jnp.float32),
                     ((0, 0), (0, n_pad - n)))
    res_p = None
    if residual is not None:
        assert residual.shape == (m, n)
        res_p = jnp.pad(residual.astype(jnp.float32), ((0, 0), (0, n_pad - n)))

    tn = _pick_tn(n_pad, k_total)
    gn = n_pad // tn
    tk = _pick_tk(cs[0], tn, force_tk) if nf == 1 else None

    # VMEM budget: 2x (double-buffered) streamed row tiles + resident weights.
    row_bytes = (k_total * 2 + tn * out_bytes
                 + (tn * 4 if res_p is not None else 0)
                 + (tn * 4 if tk is not None else 0))    # f32 acc scratch
    fixed_bytes = 2 * (min(tk or k_total, k_total) * tn * 2) + 2 * tn * 4
    tm, m_pad = _pick_tm(m, row_bytes, fixed_bytes)
    gm = m_pad // tm

    if m_pad != m:
        xs_b = [jnp.pad(x, ((0, m_pad - m), (0, 0))) for x in xs_b]
        if res_p is not None:
            res_p = jnp.pad(res_p, ((0, m_pad - m), (0, 0)))

    if tk is None:
        in_specs = ([pl.BlockSpec((tm, c), lambda j, i: (i, 0)) for c in cs]
                    + [pl.BlockSpec((c, tn), lambda j, i: (0, j)) for c in cs]
                    + [pl.BlockSpec((1, tn), lambda j, i: (0, j))])
        args = xs_b + ws_b + [bias_p]
        if res_p is not None:
            in_specs.append(pl.BlockSpec((tm, tn), lambda j, i: (i, j)))
            args.append(res_p)
        out_spec = pl.BlockSpec((tm, tn), lambda j, i: (i, j))
        kernel = _make_fused_kernel(nf, res_p is not None)
        grid = (gn, gm)                    # row axis innermost (weights resident)
        scratch = []
        dims = ("parallel", "parallel")
    else:
        k = cs[0]
        in_specs = [pl.BlockSpec((tm, tk), lambda j, i, kk: (i, kk)),
                    pl.BlockSpec((tk, tn), lambda j, i, kk: (kk, j)),
                    pl.BlockSpec((1, tn), lambda j, i, kk: (0, j))]
        args = [xs_b[0], ws_b[0], bias_p]
        if res_p is not None:
            in_specs.append(pl.BlockSpec((tm, tn), lambda j, i, kk: (i, j)))
            args.append(res_p)
        out_spec = pl.BlockSpec((tm, tn), lambda j, i, kk: (i, j))
        kernel = _make_ktiled_kernel(res_p is not None)
        grid = (gn, gm, k // tk)           # reduction axis innermost
        scratch = [pltpu.VMEM((tm, tn), jnp.float32)]
        dims = ("parallel", "parallel", "arbitrary")

    out = pl.pallas_call(
        kernel,
        out_shape=jax.ShapeDtypeStruct((m_pad, n_pad), out_dtype),
        grid_spec=pltpu.PrefetchScalarGridSpec(
            num_scalar_prefetch=0,
            grid=grid,
            in_specs=in_specs,
            out_specs=out_spec,
            scratch_shapes=scratch),
        compiler_params=pltpu.CompilerParams(
            dimension_semantics=dims,
            vmem_limit_bytes=_VMEM_LIMIT),
    )(*args)
    return out[:m, :n]


# ----------------------------------------------------------------------------
# DSAB_block forward
# ----------------------------------------------------------------------------
def _im2col_3x3(x_nhwc):
    # TODO(synk): a halo-band in-kernel DMA (9 shifted dots from a (th+2)-row
    # slab) would avoid materialising this 9x patch tensor in HBM; kept as jnp
    # layout plumbing here (already in bf16, so its traffic is halved).
    n, h, w, c = x_nhwc.shape
    xp = jnp.pad(x_nhwc, ((0, 0), (1, 1), (1, 1), (0, 0)))
    taps = [xp[:, dh:dh + h, dw:dw + w, :] for dh in range(3) for dw in range(3)]
    return jnp.concatenate(taps, axis=-1).reshape(n * h * w, 9 * c)


def dsab_block_forward(x_nchw, params, *, identity=False):
    x = jnp.transpose(x_nchw, (0, 2, 3, 1))        # NCHW -> NHWC (lane-dense C)
    n, h, w, c = x.shape
    m = n * h * w
    x_bf = x.astype(jnp.bfloat16)

    feats = [x_bf.reshape(m, c)]                   # one-shot-aggregation inputs
    cur = x_bf
    for (wk, scale, bias) in params["layers"]:      # 3x3 conv + BN + ReLU
        kh, kw_, cin, cout = wk.shape
        w_fold = (wk * scale.reshape(1, 1, 1, cout)).reshape(kh * kw_ * cin, cout)
        patches = _im2col_3x3(cur)                  # (M, 9*cin) bf16
        y = fused_matmul_bias_relu([patches], [w_fold], bias,
                                   out_dtype=jnp.bfloat16)
        feats.append(y)
        cur = y.reshape(n, h, w, cout)

    # 1x1 conv + BN + ReLU (+ identity): consume every feature map directly,
    # never materialising the channel-concat tensor in HBM.
    w1, s1, b1 = params["concat"]
    ccat, cc = int(w1.shape[2]), int(w1.shape[3])
    w1_fold = w1.reshape(ccat, cc) * s1.reshape(1, cc)
    sizes = [int(f.shape[1]) for f in feats]
    assert sum(sizes) == ccat
    offs = [0]
    for s in sizes:
        offs.append(offs[-1] + s)
    w_slices = [w1_fold[offs[i]:offs[i + 1]] for i in range(len(sizes))]

    residual = None
    if identity:
        assert cc == c, "identity add requires concat_ch == in_ch"
        residual = x.reshape(m, c).astype(jnp.float32)

    out = fused_matmul_bias_relu(feats, w_slices, b1, residual=residual,
                                 out_dtype=x_nchw.dtype)
    return jnp.transpose(out.reshape(n, h, w, cc), (0, 3, 1, 2))   # back to NCHW


# ----------------------------------------------------------------------------
# Parameter construction (BN folded to scale/bias) and pure-JAX reference
# ----------------------------------------------------------------------------
def init_dsab_params(key, in_ch, stage_ch, concat_ch, layer_per_block, eps=1e-5):
    def bn_fold(kg, kb, km, kv, ch):
        gamma = 1.0 + 0.1 * jax.random.normal(kg, (ch,), jnp.float32)
        beta = 0.1 * jax.random.normal(kb, (ch,), jnp.float32)
        mean = 0.1 * jax.random.normal(km, (ch,), jnp.float32)
        var = jnp.abs(jax.random.normal(kv, (ch,), jnp.float32)) + 0.5
        scale = gamma / jnp.sqrt(var + eps)
        bias = beta - mean * scale
        return scale, bias

    layers = []
    cin = in_ch
    for _ in range(layer_per_block):
        key, kw, kg, kb, km, kv = jax.random.split(key, 6)
        wk = jax.random.normal(kw, (3, 3, cin, stage_ch), jnp.float32)
        wk = wk * (1.0 / math.sqrt(9 * cin))
        scale, bias = bn_fold(kg, kb, km, kv, stage_ch)
        layers.append((wk, scale, bias))
        cin = stage_ch

    ccat = in_ch + layer_per_block * stage_ch
    key, kw, kg, kb, km, kv = jax.random.split(key, 6)
    w1 = jax.random.normal(kw, (1, 1, ccat, concat_ch), jnp.float32)
    w1 = w1 * (1.0 / math.sqrt(ccat))
    scale1, bias1 = bn_fold(kg, kb, km, kv, concat_ch)
    return {"layers": layers, "concat": (w1, scale1, bias1)}


def _conv_bn_relu_ref(x, wk, scale, bias, compute_dtype):
    w_fold = wk * scale.reshape((1,) * (wk.ndim - 1) + (-1,))
    y = jax.lax.conv_general_dilated(
        x.astype(compute_dtype), w_fold.astype(compute_dtype),
        window_strides=(1, 1), padding="SAME",
        dimension_numbers=("NHWC", "HWIO", "NHWC"),
        preferred_element_type=jnp.float32,
        precision=jax.lax.Precision.HIGHEST)
    return jnp.maximum(y + bias, 0.0)


def dsab_block_ref(x_nchw, params, *, identity=False,
                   compute_dtype=jnp.float32):
    x = jnp.transpose(x_nchw, (0, 2, 3, 1))
    cur = x.astype(compute_dtype)
    feats = [cur]
    for (wk, scale, bias) in params["layers"]:
        cur = _conv_bn_relu_ref(cur, wk, scale, bias,
                                compute_dtype).astype(compute_dtype)
        feats.append(cur)
    cat = jnp.concatenate(feats, axis=-1)
    w1, s1, b1 = params["concat"]
    y = _conv_bn_relu_ref(cat, w1, s1, b1, compute_dtype)
    if identity:
        y = y + x.astype(jnp.float32)
    return jnp.transpose(y, (0, 3, 1, 2)).astype(x_nchw.dtype)


if __name__ == "__main__":
    key = jax.random.PRNGKey(0)
    k_x, k_p, k_a, k_w, k_b, k_r = jax.random.split(key, 6)

    # --- DSAB block: small shapes, identity (residual) path exercised -------
    batch, in_ch, hh, ww = 2, 4, 16, 16
    stage_ch, layer_per_block = 8, 3
    concat_ch = in_ch                    # == in_ch so the identity path runs
    identity = True

    x = jax.random.normal(k_x, (batch, in_ch, hh, ww), jnp.float32)
    params = init_dsab_params(k_p, in_ch, stage_ch, concat_ch, layer_per_block)

    fwd = jax.jit(functools.partial(dsab_block_forward, identity=identity))
    y = jax.block_until_ready(fwd(x, params))
    assert y.shape == (batch, concat_ch, hh, ww) and y.dtype == x.dtype

    # structural check vs a bf16-matched reference (same numerics as kernel)
    y_bf = dsab_block_ref(x, params, identity=identity,
                          compute_dtype=jnp.bfloat16)
    err_bf = float(jnp.max(jnp.abs(y - y_bf)))
    assert jnp.allclose(y, y_bf, atol=2e-2, rtol=2e-2), (
        f"mismatch vs bf16-matched reference (max |err| = {err_bf})")

    # semantic check vs the pure-f32 spec (bf16 GEMMs vs f32 convolutions)
    y_f32 = dsab_block_ref(x, params, identity=identity,
                           compute_dtype=jnp.float32)
    err_f32 = float(jnp.max(jnp.abs(y - y_f32)))
    assert jnp.allclose(y, y_f32, atol=5e-2, rtol=5e-2), (
        f"mismatch vs f32 reference (max |err| = {err_f32})")

    # --- exercise the K-tiled accumulator GEMM path directly ----------------
    mu, ku, nu = 256, 512, 96            # K % 128 == 0 -> 4 K-steps with force_tk
    a = jax.random.normal(k_a, (mu, ku), jnp.float32)
    wu = jax.random.normal(k_w, (ku, nu), jnp.float32) / math.sqrt(ku)
    bu = 0.1 * jax.random.normal(k_b, (nu,), jnp.float32)
    ru = jax.random.normal(k_r, (mu, nu), jnp.float32)
    mm = jax.jit(functools.partial(fused_matmul_bias_relu,
                                   out_dtype=jnp.float32, force_tk=128))
    out_k = jax.block_until_ready(mm([a], [wu], bu, residual=ru))
    ref_k = jnp.maximum(
        jnp.dot(a.astype(jnp.bfloat16), wu.astype(jnp.bfloat16),
                preferred_element_type=jnp.float32) + bu.reshape(1, nu),
        0.0) + ru
    err_k = float(jnp.max(jnp.abs(out_k - ref_k)))
    assert jnp.allclose(out_k, ref_k, atol=2e-3, rtol=2e-3), (
        f"K-tiled GEMM mismatch (max |err| = {err_k})")

    print("KERNEL_OK")
</pallas_src>

<mosaic_0001>
module attributes {stable_mosaic.version = 11 : i64} {
  func.func @kernel(%arg0: i32, %arg1: i32, %arg2: memref<256x36xbf16, #tpu.memory_space<vmem>>, %arg3: memref<36x128xbf16, #tpu.memory_space<vmem>>, %arg4: memref<1x128xf32, #tpu.memory_space<vmem>>, %arg5: memref<256x128xbf16, #tpu.memory_space<vmem>>) attributes {dimension_semantics = [#tpu.dimension_semantics<parallel>, #tpu.dimension_semantics<parallel>], iteration_bounds = array<i64: 1, 2>, scalar_prefetch = 0 : i64, scratch_operands = 0 : i64, tpu.core_type = #tpu.core_type<tc>, window_params = [{transform_indices = @transform_0, window_bounds = array<i64: 256, 36>}, {transform_indices = @transform_1, window_bounds = array<i64: 36, 128>}, {transform_indices = @transform_2, window_bounds = array<i64: 1, 128>}, {transform_indices = @transform_3, window_bounds = array<i64: 256, 128>}]} {
    %c0 = arith.constant 0 : index
    %c0_0 = arith.constant 0 : index
    %0 = vector.load %arg2[%c0, %c0_0] : memref<256x36xbf16, #tpu.memory_space<vmem>>, vector<256x36xbf16>
    %c0_1 = arith.constant 0 : index
    %c0_2 = arith.constant 0 : index
    %1 = vector.load %arg3[%c0_1, %c0_2] : memref<36x128xbf16, #tpu.memory_space<vmem>>, vector<36x128xbf16>
    %cst = arith.constant dense<0.000000e+00> : vector<256x128xf32>
    %2 = tpu.matmul %0, %1, %cst {dimension_numbers = #tpu.dot_dimension_numbers<[1], [0], [0], [1], [0, 0, 1, 1], [], []>} : vector<256x36xbf16>, vector<36x128xbf16>, vector<256x128xf32> -> vector<256x128xf32>
    %c0_3 = arith.constant 0 : index
    %c0_4 = arith.constant 0 : index
    %3 = vector.load %arg4[%c0_3, %c0_4] : memref<1x128xf32, #tpu.memory_space<vmem>>, vector<1x128xf32>
    %4 = vector.broadcast %3 : vector<1x128xf32> to vector<256x128xf32>
    %5 = arith.addf %2, %4 : vector<256x128xf32>
    %cst_5 = arith.constant 0.000000e+00 : f32
    %6 = vector.broadcast %cst_5 : f32 to vector<256x128xf32>
    %7 = arith.maximumf %5, %6 : vector<256x128xf32>
    %8 = arith.truncf %7 : vector<256x128xf32> to vector<256x128xbf16>
    %c0_6 = arith.constant 0 : index
    %c0_7 = arith.constant 0 : index
    %9 = vector.load %arg5[%c0_6, %c0_7] : memref<256x128xbf16, #tpu.memory_space<vmem>>, vector<256x128xbf16>
    tpu.vector_store %arg5[%c0_6, %c0_7], %8 {strides = array<i32>} : memref<256x128xbf16, #tpu.memory_space<vmem>>, vector<256x128xbf16>,
    return
  }
  func.func @transform_0(%arg0: i32, %arg1: i32) -> (i32, i32) {
    %c0_i32 = arith.constant 0 : i32
    %c0_i32_0 = arith.constant 0 : i32
    return %arg1, %c0_i32 : i32, i32
  }
  func.func @transform_1(%arg0: i32, %arg1: i32) -> (i32, i32) {
    %c0_i32 = arith.constant 0 : i32
    %c0_i32_0 = arith.constant 0 : i32
    return %c0_i32, %arg0 : i32, i32
  }
  func.func @transform_2(%arg0: i32, %arg1: i32) -> (i32, i32) {
    %c0_i32 = arith.constant 0 : i32
    %c0_i32_0 = arith.constant 0 : i32
    return %c0_i32, %arg0 : i32, i32
  }
  func.func @transform_3(%arg0: i32, %arg1: i32) -> (i32, i32) {
    %c0_i32 = arith.constant 0 : i32
    return %arg1, %arg0 : i32, i32
  }
}

module attributes {stable_mosaic.version = 11 : i64} {
  func.func @kernel(%arg0: i32, %arg1: i32, %arg2: memref<256x72xbf16, #tpu.memory_space<vmem>>, %arg3: memref<72x128xbf16, #tpu.memory_space<vmem>>, %arg4: memref<1x128xf32, #tpu.memory_space<vmem>>, %arg5: memref<256x128xbf16, #tpu.memory_space<vmem>>) attributes {dimension_semantics = [#tpu.dimension_semantics<parallel>, #tpu.dimension_semantics<parallel>], iteration_bounds = array<i64: 1, 2>, scalar_prefetch = 0 : i64, scratch_operands = 0 : i64, tpu.core_type = #tpu.core_type<tc>, window_params = [{transform_indices = @transform_0, window_bounds = array<i64: 256, 72>}, {transform_indices = @transform_1, window_bounds = array<i64: 72, 128>}, {transform_indices = @transform_2, window_bounds = array<i64: 1, 128>}, {transform_indices = @transform_3, window_bounds = array<i64: 256, 128>}]} {
    %c0 = arith.constant 0 : index
    %c0_0 = arith.constant 0 : index
    %0 = vector.load %arg2[%c0, %c0_0] : memref<256x72xbf16, #tpu.memory_space<vmem>>, vector<256x72xbf16>
    %c0_1 = arith.constant 0 : index
    %c0_2 = arith.constant 0 : index
    %1 = vector.load %arg3[%c0_1, %c0_2] : memref<72x128xbf16, #tpu.memory_space<vmem>>, vector<72x128xbf16>
    %cst = arith.constant dense<0.000000e+00> : vector<256x128xf32>
    %2 = tpu.matmul %0, %1, %cst {dimension_numbers = #tpu.dot_dimension_numbers<[1], [0], [0], [1], [0, 0, 1, 1], [], []>} : vector<256x72xbf16>, vector<72x128xbf16>, vector<256x128xf32> -> vector<256x128xf32>
    %c0_3 = arith.constant 0 : index
    %c0_4 = arith.constant 0 : index
    %3 = vector.load %arg4[%c0_3, %c0_4] : memref<1x128xf32, #tpu.memory_space<vmem>>, vector<1x128xf32>
    %4 = vector.broadcast %3 : vector<1x128xf32> to vector<256x128xf32>
    %5 = arith.addf %2, %4 : vector<256x128xf32>
    %cst_5 = arith.constant 0.000000e+00 : f32
    %6 = vector.broadcast %cst_5 : f32 to vector<256x128xf32>
    %7 = arith.maximumf %5, %6 : vector<256x128xf32>
    %8 = arith.truncf %7 : vector<256x128xf32> to vector<256x128xbf16>
    %c0_6 = arith.constant 0 : index
    %c0_7 = arith.constant 0 : index
    %9 = vector.load %arg5[%c0_6, %c0_7] : memref<256x128xbf16, #tpu.memory_space<vmem>>, vector<256x128xbf16>
    tpu.vector_store %arg5[%c0_6, %c0_7], %8 {strides = array<i32>} : memref<256x128xbf16, #tpu.memory_space<vmem>>, vector<256x128xbf16>,
    return
  }
  func.func @transform_0(%arg0: i32, %arg1: i32) -> (i32, i32) {
    %c0_i32 = arith.constant 0 : i32
    %c0_i32_0 = arith.constant 0 : i32
    return %arg1, %c0_i32 : i32, i32
  }
  func.func @transform_1(%arg0: i32, %arg1: i32) -> (i32, i32) {
    %c0_i32 = arith.constant 0 : i32
    %c0_i32_0 = arith.constant 0 : i32
    return %c0_i32, %arg0 : i32, i32
  }
  func.func @transform_2(%arg0: i32, %arg1: i32) -> (i32, i32) {
    %c0_i32 = arith.constant 0 : i32
    %c0_i32_0 = arith.constant 0 : i32
    return %c0_i32, %arg0 : i32, i32
  }
  func.func @transform_3(%arg0: i32, %arg1: i32) -> (i32, i32) {
    %c0_i32 = arith.constant 0 : i32
    return %arg1, %arg0 : i32, i32
  }
}

module attributes {stable_mosaic.version = 11 : i64} {
  func.func @kernel(%arg0: i32, %arg1: i32, %arg2: memref<256x4xbf16, #tpu.memory_space<vmem>>, %arg3: memref<256x8xbf16, #tpu.memory_space<vmem>>, %arg4: memref<256x8xbf16, #tpu.memory_space<vmem>>, %arg5: memref<256x8xbf16, #tpu.memory_space<vmem>>, %arg6: memref<4x128xbf16, #tpu.memory_space<vmem>>, %arg7: memref<8x128xbf16, #tpu.memory_space<vmem>>, %arg8: memref<8x128xbf16, #tpu.memory_space<vmem>>, %arg9: memref<8x128xbf16, #tpu.memory_space<vmem>>, %arg10: memref<1x128xf32, #tpu.memory_space<vmem>>, %arg11: memref<256x128xf32, #tpu.memory_space<vmem>>, %arg12: memref<256x128xf32, #tpu.memory_space<vmem>>) attributes {dimension_semantics = [#tpu.dimension_semantics<parallel>, #tpu.dimension_semantics<parallel>], iteration_bounds = array<i64: 1, 2>, scalar_prefetch = 0 : i64, scratch_operands = 0 : i64, tpu.core_type = #tpu.core_type<tc>, window_params = [{transform_indices = @transform_0, window_bounds = array<i64: 256, 4>}, {transform_indices = @transform_1, window_bounds = array<i64: 256, 8>}, {transform_indices = @transform_2, window_bounds = array<i64: 256, 8>}, {transform_indices = @transform_3, window_bounds = array<i64: 256, 8>}, {transform_indices = @transform_4, window_bounds = array<i64: 4, 128>}, {transform_indices = @transform_5, window_bounds = array<i64: 8, 128>}, {transform_indices = @transform_6, window_bounds = array<i64: 8, 128>}, {transform_indices = @transform_7, window_bounds = array<i64: 8, 128>}, {transform_indices = @transform_8, window_bounds = array<i64: 1, 128>}, {transform_indices = @transform_9, window_bounds = array<i64: 256, 128>}, {transform_indices = @transform_10, window_bounds = array<i64: 256, 128>}]} {
    %c0 = arith.constant 0 : index
    %c0_0 = arith.constant 0 : index
    %0 = vector.load %arg2[%c0, %c0_0] : memref<256x4xbf16, #tpu.memory_space<vmem>>, vector<256x4xbf16>
    %c0_1 = arith.constant 0 : index
    %c0_2 = arith.constant 0 : index
    %1 = vector.load %arg6[%c0_1, %c0_2] : memref<4x128xbf16, #tpu.memory_space<vmem>>, vector<4x128xbf16>
    %cst = arith.constant dense<0.000000e+00> : vector<256x128xf32>
    %2 = tpu.matmul %0, %1, %cst {dimension_numbers = #tpu.dot_dimension_numbers<[1], [0], [0], [1], [0, 0, 1, 1], [], []>} : vector<256x4xbf16>, vector<4x128xbf16>, vector<256x128xf32> -> vector<256x128xf32>
    %c0_3 = arith.constant 0 : index
    %c0_4 = arith.constant 0 : index
    %3 = vector.load %arg3[%c0_3, %c0_4] : memref<256x8xbf16, #tpu.memory_space<vmem>>, vector<256x8xbf16>
    %c0_5 = arith.constant 0 : index
    %c0_6 = arith.constant 0 : index
    %4 = vector.load %arg7[%c0_5, %c0_6] : memref<8x128xbf16, #tpu.memory_space<vmem>>, vector<8x128xbf16>
    %cst_7 = arith.constant dense<0.000000e+00> : vector<256x128xf32>
    %5 = tpu.matmul %3, %4, %cst_7 {dimension_numbers = #tpu.dot_dimension_numbers<[1], [0], [0], [1], [0, 0, 1, 1], [], []>} : vector<256x8xbf16>, vector<8x128xbf16>, vector<256x128xf32> -> vector<256x128xf32>
    %6 = arith.addf %2, %5 : vector<256x128xf32>
    %c0_8 = arith.constant 0 : index
    %c0_9 = arith.constant 0 : index
    %7 = vector.load %arg4[%c0_8, %c0_9] : memref<256x8xbf16, #tpu.memory_space<vmem>>, vector<256x8xbf16>
    %c0_10 = arith.constant 0 : index
    %c0_11 = arith.constant 0 : index
    %8 = vector.load %arg8[%c0_10, %c0_11] : memref<8x128xbf16, #tpu.memory_space<vmem>>, vector<8x128xbf16>
    %cst_12 = arith.constant dense<0.000000e+00> : vector<256x128xf32>
    %9 = tpu.matmul %7, %8, %cst_12 {dimension_numbers = #tpu.dot_dimension_numbers<[1], [0], [0], [1], [0, 0, 1, 1], [], []>} : vector<256x8xbf16>, vector<8x128xbf16>, vector<256x128xf32> -> vector<256x128xf32>
    %10 = arith.addf %6, %9 : vector<256x128xf32>
    %c0_13 = arith.constant 0 : index
    %c0_14 = arith.constant 0 : index
    %11 = vector.load %arg5[%c0_13, %c0_14] : memref<256x8xbf16, #tpu.memory_space<vmem>>, vector<256x8xbf16>
    %c0_15 = arith.constant 0 : index
    %c0_16 = arith.constant 0 : index
    %12 = vector.load %arg9[%c0_15, %c0_16] : memref<8x128xbf16, #tpu.memory_space<vmem>>, vector<8x128xbf16>
    %cst_17 = arith.constant dense<0.000000e+00> : vector<256x128xf32>
    %13 = tpu.matmul %11, %12, %cst_17 {dimension_numbers = #tpu.dot_dimension_numbers<[1], [0], [0], [1], [0, 0, 1, 1], [], []>} : vector<256x8xbf16>, vector<8x128xbf16>, vector<256x128xf32> -> vector<256x128xf32>
    %14 = arith.addf %10, %13 : vector<256x128xf32>
    %c0_18 = arith.constant 0 : index
    %c0_19 = arith.constant 0 : index
    %15 = vector.load %arg10[%c0_18, %c0_19] : memref<1x128xf32, #tpu.memory_space<vmem>>, vector<1x128xf32>
    %16 = vector.broadcast %15 : vector<1x128xf32> to vector<256x128xf32>
    %17 = arith.addf %14, %16 : vector<256x128xf32>
    %cst_20 = arith.constant 0.000000e+00 : f32
    %18 = vector.broadcast %cst_20 : f32 to vector<256x128xf32>
    %19 = arith.maximumf %17, %18 : vector<256x128xf32>
    %c0_21 = arith.constant 0 : index
    %c0_22 = arith.constant 0 : index
    %20 = vector.load %arg11[%c0_21, %c0_22] : memref<256x128xf32, #tpu.memory_space<vmem>>, vector<256x128xf32>
    %21 = arith.addf %19, %20 : vector<256x128xf32>
    %c0_23 = arith.constant 0 : index
    %c0_24 = arith.constant 0 : index
    %22 = vector.load %arg12[%c0_23, %c0_24] : memref<256x128xf32, #tpu.memory_space<vmem>>, vector<256x128xf32>
    tpu.vector_store %arg12[%c0_23, %c0_24], %21 {strides = array<i32>} : memref<256x128xf32, #tpu.memory_space<vmem>>, vector<256x128xf32>,
    return
  }
  func.func @transform_0(%arg0: i32, %arg1: i32) -> (i32, i32) {
    %c0_i32 = arith.constant 0 : i32
    %c0_i32_0 = arith.constant 0 : i32
    return %arg1, %c0_i32 : i32, i32
  }
  func.func @transform_1(%arg0: i32, %arg1: i32) -> (i32, i32) {
    %c0_i32 = arith.constant 0 : i32
    %c0_i32_0 = arith.constant 0 : i32
    return %arg1, %c0_i32 : i32, i32
  }
  func.func @transform_2(%arg0: i32, %arg1: i32) -> (i32, i32) {
    %c0_i32 = arith.constant 0 : i32
    %c0_i32_0 = arith.constant 0 : i32
    return %arg1, %c0_i32 : i32, i32
  }
  func.func @transform_3(%arg0: i32, %arg1: i32) -> (i32, i32) {
    %c0_i32 = arith.constant 0 : i32
    %c0_i32_0 = arith.constant 0 : i32
    return %arg1, %c0_i32 : i32, i32
  }
  func.func @transform_4(%arg0: i32, %arg1: i32) -> (i32, i32) {
    %c0_i32 = arith.constant 0 : i32
    %c0_i32_0 = arith.constant 0 : i32
    return %c0_i32, %arg0 : i32, i32
  }
  func.func @transform_5(%arg0: i32, %arg1: i32) -> (i32, i32) {
    %c0_i32 = arith.constant 0 : i32
    %c0_i32_0 = arith.constant 0 : i32
    return %c0_i32, %arg0 : i32, i32
  }
  func.func @transform_6(%arg0: i32, %arg1: i32) -> (i32, i32) {
    %c0_i32 = arith.constant 0 : i32
    %c0_i32_0 = arith.constant 0 : i32
    return %c0_i32, %arg0 : i32, i32
  }
  func.func @transform_7(%arg0: i32, %arg1: i32) -> (i32, i32) {
    %c0_i32 = arith.constant 0 : i32
    %c0_i32_0 = arith.constant 0 : i32
    return %c0_i32, %arg0 : i32, i32
  }
  func.func @transform_8(%arg0: i32, %arg1: i32) -> (i32, i32) {
    %c0_i32 = arith.constant 0 : i32
    %c0_i32_0 = arith.constant 0 : i32
    return %c0_i32, %arg0 : i32, i32
  }
  func.func @transform_9(%arg0: i32, %arg1: i32) -> (i32, i32) {
    %c0_i32 = arith.constant 0 : i32
    return %arg1, %arg0 : i32, i32
  }
  func.func @transform_10(%arg0: i32, %arg1: i32) -> (i32, i32) {
    %c0_i32 = arith.constant 0 : i32
    return %arg1, %arg0 : i32, i32
  }
}

</mosaic_0001>

<bundles_post_ra>
// kernel: dsab_block_forward.4
= control target key start
LH: loop header
LB: loop body
LE: loop exit
PB: predicated region body
PF: predicated region fallthrough
CT: control target
= control target key end

     0   :  { %s1233_s12 = smov 0   ;;  %s1235_s13 = smov 0   ;;  %s1371_s0 = inlined_call_operand.vmem [shape: bf16[512,36], index: 0, kind: input, shape index: {}]   ;;  %s1372_s1 = inlined_call_operand.vmem [shape: bf16[36,128], index: 1, kind: input, shape index: {}]   ;;  %s1373_s2 = inlined_call_operand.vmem [shape: f32[1,128], index: 2, kind: input, shape index: {}]   ;;  %s1374_s3 = inlined_call_operand.vmem [shape: bf16[512,128], index: 3, kind: output, shape index: {}]  }
   0x1   :  { %s1237_s14 = smov 0  }
   0x2 LB: > { %s22_s15 = sadd.s32 1, %s1207_s13  ;;  %p879_p0 = scmp.ge.s32.totalorder %s1211_s14, 1  ;;  %s1211_s14 = sphi %s1237_s14, %s13_s14   ;;  %s1207_s13 = sphi %s1235_s13, %s1376_s13   ;;  %s1203_s12 = sphi %s1233_s12, %s1375_s12  }
   0x3   : > { %p23_p1 = scmp.ge.s32.totalorder %s22_s15, 2  ;;  %p169_p2 = scmp.lt.s32.totalorder %s1211_s14, 3 }
   0x5   : > { %s1378_s15 = smov (%p23_p1, %s22_s15), 0  ;;  %p170_p3 = pnand %p879_p0, %p169_p2 }
   0x6   : > { %s880_s20 = sshll.u32 (!%p170_p3), %s1203_s12, 5 }
   0x7   : > { %173 = sbr.rel (%p170_p3) target bundleno = 255 (0xff), region = 32  ;;  %p204_p4 = scmp.lt.s32.totalorder (!%p170_p3), %s880_s20, 63 }
   0xc   : > { %v1170_v0 = vld [vmem:[%s1372_s1 + $0x10] ss:$0 sps:$4 sm:$0x33]   ;;  %vm414_vm0 = vcmask 1041408   ;;  %v1171_v1 = vld [vmem:[%s1372_s1 + $0x8] sm:$0xff]   ;;  %v1172_v3 = vld [vmem:[%s1372_s1] sm:$0xff]  }
   0xd   : > { %1144 = vmatprep.subr.msk.bf16.mxu0 %vm414_vm0, %v1170_v0  ;;  %1145 = vmatprep.subr.msk.bf16.mxu1 %vm414_vm0, %v1170_v0  ;;  %v416_v2 = vsel %vm414_vm0, %v1170_v0, 0  ;;  %s1380_s20 = smov (!%p204_p4, %s880_s20), 63  ;;  %vm365_vm1 = vcmask 293888   ;;  %v1305_v20 = vld [vmem:[%s1373_s2] ss:$0 sm:$0xff] }
   0xe   : > { %1101 = vmatpush3.bf16.msra.mxu0 %v416_v2  ;;  %1141 = vmatpush3.bf16.msra.mxu1 %v416_v2  ;;  %s881_s23 = sshll.u32 %s1380_s20, 2 }
   0xf   : > { %1102 = vmatprep.subr.bf16.mxu0 %v1171_v1  ;;  %1139 = vmatprep.subr.bf16.mxu1 %v1171_v1  ;;  %s1268_s26 = scalar_lea.vmem %s1371_s0, %s881_s23  ;;  %s1320_s4 = scalar_lea.vmem %s1374_s3, %s881_s23 }
  0x10   : > { %v1173_v4 = vld [vmem:[%s1268_s26] sm:$0xff]   ;;  %v1175_v6 = vld [vmem:[%s1268_s26 + $0x8] sm:$0xff]   ;;  %v1177_v8 = vld [vmem:[%s1268_s26 + $0x10] sm:$0xff]  }
  0x11   : > { %v1174_v5 = vld [vmem:[%s1268_s26 + $0x40] sm:$0xff]   ;;  %1106 = vmatprep.mubr.msk.bf16.mxu0 %vm365_vm1, %v1173_v4  ;;  %v1176_v7 = vld [vmem:[%s1268_s26 + $0x48] sm:$0xff]   ;;  %v1178_v9 = vld [vmem:[%s1268_s26 + $0x50] sm:$0xff]  }
  0x12   : > { %1103 = vmatpush3.bf16.msra.mxu0 %v1171_v1  ;;  %1142 = vmatpush3.bf16.msra.mxu1 %v1171_v1  ;;  %v1179_v10 = vld [vmem:[%s1268_s26 + $0x18] sm:$0xff]   ;;  %v1181_v12 = vld [vmem:[%s1268_s26 + $0x20] sm:$0xff]   ;;  %v1183_v14 = vld [vmem:[%s1268_s26 + $0x28] sm:$0xff]  }
  0x13   : > { %1104 = vmatprep.subr.bf16.mxu0 %v1172_v3  ;;  %1140 = vmatprep.subr.bf16.mxu1 %v1172_v3  ;;  %v1180_v11 = vld [vmem:[%s1268_s26 + $0x58] sm:$0xff]   ;;  %v1182_v13 = vld [vmem:[%s1268_s26 + $0x60] sm:$0xff]   ;;  %v1184_v15 = vld [vmem:[%s1268_s26 + $0x68] sm:$0xff]  }
  0x14   : > { %1122 = vmatprep.mubr.msk.bf16.mxu1 %vm365_vm1, %v1174_v5  ;;  %v1185_v16 = vld [vmem:[%s1268_s26 + $0x30] sm:$0xff]   ;;  %v1187_v18 = vld [vmem:[%s1268_s26 + $0x38] sm:$0xff]  }
  0x15   : > { %v1186_v17 = vld [vmem:[%s1268_s26 + $0x70] sm:$0xff]   ;;  %v1188_v19 = vld [vmem:[%s1268_s26 + $0x78] sm:$0xff]  }
  0x16   : > { %1105 = vmatpush3.bf16.msra.mxu0 %v1172_v3  ;;  %1143 = vmatpush3.bf16.msra.mxu1 %v1172_v3 }
  0x19   : > { %1107 = vmatmul.mubr.msk.bf16.vlgmr.msra.gmra.mxu0 %vm365_vm1, %v1175_v6  ;;  %1123 = vmatmul.mubr.msk.bf16.vlgmr.msra.gmra.mxu1 %vm365_vm1, %v1176_v7 }
  0x1a   : > { %1110 = vmatprep.mubr.msk.bf16.mxu0 %vm365_vm1, %v1177_v8  ;;  %1126 = vmatprep.mubr.msk.bf16.mxu1 %vm365_vm1, %v1178_v9 }
  0x21   : > { %1111 = vmatmul.mubr.msk.bf16.gmra.mxu0 %vm365_vm1, %v1179_v10  ;;  %1127 = vmatmul.mubr.msk.bf16.gmra.mxu1 %vm365_vm1, %v1180_v11 }
  0x22   : > { %1114 = vmatprep.mubr.msk.bf16.mxu0 %vm365_vm1, %v1181_v12  ;;  %1130 = vmatprep.mubr.msk.bf16.mxu1 %vm365_vm1, %v1182_v13 }
  0x29   : > { %1115 = vmatmul.mubr.msk.bf16.gmra.mxu0 %vm365_vm1, %v1183_v14  ;;  %1131 = vmatmul.mubr.msk.bf16.gmra.mxu1 %vm365_vm1, %v1184_v15 }
  0x2a   : > { %1118 = vmatprep.mubr.msk.bf16.mxu0 %vm365_vm1, %v1185_v16  ;;  %1134 = vmatprep.mubr.msk.bf16.mxu1 %vm365_vm1, %v1186_v17 }
  0x31   : > { %1119 = vmatmul.mubr.msk.bf16.gmra.mxu0 %vm365_vm1, %v1187_v18  ;;  %1135 = vmatmul.mubr.msk.bf16.gmra.mxu1 %vm365_vm1, %v1188_v19 }
  0xd9   : > { %v1108_v21 = vpop.f32.mrf.mxu0  ;;  %v1124_v22 = vpop.f32.mrf.mxu1 }
  0xda   : > { %v461_v23 = vadd.f32 %v1108_v21, %v1305_v20  ;;  %v525_v24 = vadd.f32 %v1124_v22, %v1305_v20 }
  0xdb   : > { %v452_v25 = vpop.f32.mrf.mxu0  ;;  %v516_v26 = vpop.f32.mrf.mxu1 }
  0xdc   : > { %v453_v27 = vadd.f32 %v1305_v20, %v452_v25  ;;  %v517_v28 = vadd.f32 %v1305_v20, %v516_v26  ;;  %v581_v33 = vmax.f32 %v461_v23, 0.0  ;;  %v597_v34 = vmax.f32 %v525_v24, 0.0 }
  0xdd   : > { %v1109_v29 = vpop.f32.mrf.mxu0  ;;  %v1125_v30 = vpop.f32.mrf.mxu1 }
  0xde   : > { %v464_v31 = vadd.f32 %v1109_v29, %v1305_v20  ;;  %v528_v32 = vadd.f32 %v1125_v30, %v1305_v20  ;;  %v579_v41 = vmax.f32 %v453_v27, 0.0  ;;  %v595_v42 = vmax.f32 %v517_v28, 0.0 }
  0xdf   : > { %v455_v35 = vpop.f32.mrf.mxu0  ;;  %v519_v36 = vpop.f32.mrf.mxu1 }
  0xe0   : > { %v582_v37 = vmax.f32 %v464_v31, 0.0  ;;  %v598_v38 = vmax.f32 %v528_v32, 0.0  ;;  %v456_v39 = vadd.f32 %v1305_v20, %v455_v35  ;;  %v520_v40 = vadd.f32 %v1305_v20, %v519_v36 }
  0xe1   : > { %v1112_v43 = vpop.f32.mrf.mxu0  ;;  %v1128_v44 = vpop.f32.mrf.mxu1 }
  0xe2   : > { %v994_v45 = vpack.c.bf16 %v582_v37, %v581_v33  ;;  %v1034_v46 = vpack.c.bf16 %v598_v38, %v597_v34  ;;  %v580_v47 = vmax.f32 %v456_v39, 0.0  ;;  %v596_v48 = vmax.f32 %v520_v40, 0.0 }
  0xe3   : > { %v477_v49 = vadd.f32 %v1112_v43, %v1305_v20  ;;  %v541_v50 = vadd.f32 %v1128_v44, %v1305_v20  ;;  %v468_v51 = vpop.f32.mrf.mxu0  ;;  %v532_v52 = vpop.f32.mrf.mxu1 }
  0xe4   : > { %1066 = vst [vmem:[%s1320_s4 + $0x8] sm:$0xff] %v994_v45   ;;  %1074 = vst [vmem:[%s1320_s4 + $0x48] sm:$0xff] %v1034_v46   ;;  %v989_v53 = vpack.c.bf16 %v580_v47, %v579_v41  ;;  %v1029_v54 = vpack.c.bf16 %v596_v48, %v595_v42  ;;  %v469_v55 = vadd.f32 %v1305_v20, %v468_v51 }
  0xe5   : > { %v533_v56 = vadd.f32 %v1305_v20, %v532_v52  ;;  %v1113_v57 = vpop.f32.mrf.mxu0  ;;  %v1129_v58 = vpop.f32.mrf.mxu1  ;;  %v585_v61 = vmax.f32 %v477_v49, 0.0  ;;  %v601_v62 = vmax.f32 %v541_v50, 0.0 }
  0xe6   : > { %990 = vst [vmem:[%s1320_s4] sm:$0xff] %v989_v53   ;;  %1073 = vst [vmem:[%s1320_s4 + $0x40] sm:$0xff] %v1029_v54   ;;  %v480_v59 = vadd.f32 %v1113_v57, %v1305_v20  ;;  %v544_v60 = vadd.f32 %v1129_v58, %v1305_v20  ;;  %v583_v5 = vmax.f32 %v469_v55, 0.0 }
  0xe7   : > { %v471_v63 = vpop.f32.mrf.mxu0  ;;  %v535_v0 = vpop.f32.mrf.mxu1  ;;  %v599_v6 = vmax.f32 %v533_v56, 0.0 }
  0xe8   : > { %v586_v1 = vmax.f32 %v480_v59, 0.0  ;;  %v602_v2 = vmax.f32 %v544_v60, 0.0  ;;  %v472_v3 = vadd.f32 %v1305_v20, %v471_v63  ;;  %v536_v4 = vadd.f32 %v1305_v20, %v535_v0 }
  0xe9   : > { %v1116_v7 = vpop.f32.mrf.mxu0  ;;  %v1132_v8 = vpop.f32.mrf.mxu1 }
  0xea   : > { %v1004_v9 = vpack.c.bf16 %v586_v1, %v585_v61  ;;  %v1044_v10 = vpack.c.bf16 %v602_v2, %v601_v62  ;;  %v584_v11 = vmax.f32 %v472_v3, 0.0  ;;  %v600_v12 = vmax.f32 %v536_v4, 0.0 }
  0xeb   : > { %v493_v13 = vadd.f32 %v1116_v7, %v1305_v20  ;;  %v557_v14 = vadd.f32 %v1132_v8, %v1305_v20  ;;  %v484_v15 = vpop.f32.mrf.mxu0  ;;  %v548_v16 = vpop.f32.mrf.mxu1 }
  0xec   : > { %1068 = vst [vmem:[%s1320_s4 + $0x18] sm:$0xff] %v1004_v9   ;;  %1076 = vst [vmem:[%s1320_s4 + $0x58] sm:$0xff] %v1044_v10   ;;  %v999_v17 = vpack.c.bf16 %v584_v11, %v583_v5  ;;  %v1039_v18 = vpack.c.bf16 %v600_v12, %v599_v6  ;;  %v485_v19 = vadd.f32 %v1305_v20, %v484_v15 }
  0xed   : > { %v549_v21 = vadd.f32 %v1305_v20, %v548_v16  ;;  %v1117_v22 = vpop.f32.mrf.mxu0  ;;  %v1133_v23 = vpop.f32.mrf.mxu1  ;;  %v589_v26 = vmax.f32 %v493_v13, 0.0  ;;  %v605_v27 = vmax.f32 %v557_v14, 0.0 }
  0xee   : > { %1067 = vst [vmem:[%s1320_s4 + $0x10] sm:$0xff] %v999_v17   ;;  %1075 = vst [vmem:[%s1320_s4 + $0x50] sm:$0xff] %v1039_v18   ;;  %v496_v24 = vadd.f32 %v1117_v22, %v1305_v20  ;;  %v560_v25 = vadd.f32 %v1133_v23, %v1305_v20  ;;  %v587_v34 = vmax.f32 %v485_v19, 0.0 }
  0xef   : > { %v487_v28 = vpop.f32.mrf.mxu0  ;;  %v551_v29 = vpop.f32.mrf.mxu1  ;;  %v603_v35 = vmax.f32 %v549_v21, 0.0 }
  0xf0   : > { %v590_v30 = vmax.f32 %v496_v24, 0.0  ;;  %v606_v31 = vmax.f32 %v560_v25, 0.0  ;;  %v488_v32 = vadd.f32 %v1305_v20, %v487_v28  ;;  %v552_v33 = vadd.f32 %v1305_v20, %v551_v29 }
  0xf1   : > { %v1120_v36 = vpop.f32.mrf.mxu0  ;;  %v1136_v37 = vpop.f32.mrf.mxu1 }
  0xf2   : > { %v1014_v38 = vpack.c.bf16 %v590_v30, %v589_v26  ;;  %v1054_v39 = vpack.c.bf16 %v606_v31, %v605_v27  ;;  %v588_v40 = vmax.f32 %v488_v32, 0.0  ;;  %v604_v41 = vmax.f32 %v552_v33, 0.0 }
  0xf3   : > { %v509_v42 = vadd.f32 %v1120_v36, %v1305_v20  ;;  %v573_v43 = vadd.f32 %v1136_v37, %v1305_v20  ;;  %v500_v44 = vpop.f32.mrf.mxu0  ;;  %v564_v45 = vpop.f32.mrf.mxu1 }
  0xf4   : > { %1070 = vst [vmem:[%s1320_s4 + $0x28] sm:$0xff] %v1014_v38   ;;  %1078 = vst [vmem:[%s1320_s4 + $0x68] sm:$0xff] %v1054_v39   ;;  %v1009_v46 = vpack.c.bf16 %v588_v40, %v587_v34  ;;  %v1049_v47 = vpack.c.bf16 %v604_v41, %v603_v35  ;;  %v501_v48 = vadd.f32 %v1305_v20, %v500_v44 }
  0xf5   : > { %v565_v49 = vadd.f32 %v1305_v20, %v564_v45  ;;  %v1121_v50 = vpop.f32.mrf.mxu0  ;;  %v1137_v51 = vpop.f32.mrf.mxu1  ;;  %v593_v54 = vmax.f32 %v509_v42, 0.0  ;;  %v609_v55 = vmax.f32 %v573_v43, 0.0 }
  0xf6   : > { %1069 = vst [vmem:[%s1320_s4 + $0x20] sm:$0xff] %v1009_v46   ;;  %1077 = vst [vmem:[%s1320_s4 + $0x60] sm:$0xff] %v1049_v47   ;;  %v512_v52 = vadd.f32 %v1121_v50, %v1305_v20  ;;  %v576_v53 = vadd.f32 %v1137_v51, %v1305_v20  ;;  %v591_v62 = vmax.f32 %v501_v48, 0.0 }
  0xf7   : > { %v503_v56 = vpop.f32.mrf.mxu0  ;;  %v567_v57 = vpop.f32.mrf.mxu1  ;;  %v607_v63 = vmax.f32 %v565_v49, 0.0 }
  0xf8   : > { %v594_v58 = vmax.f32 %v512_v52, 0.0  ;;  %v610_v59 = vmax.f32 %v576_v53, 0.0  ;;  %v504_v60 = vadd.f32 %v1305_v20, %v503_v56  ;;  %v568_v61 = vadd.f32 %v1305_v20, %v567_v57 }
  0xfa   : > { %v1024_v0 = vpack.c.bf16 %v594_v58, %v593_v54  ;;  %v1064_v1 = vpack.c.bf16 %v610_v59, %v609_v55  ;;  %v592_v2 = vmax.f32 %v504_v60, 0.0  ;;  %v608_v3 = vmax.f32 %v568_v61, 0.0 }
  0xfc   : > { %1072 = vst [vmem:[%s1320_s4 + $0x38] sm:$0xff] %v1024_v0   ;;  %1080 = vst [vmem:[%s1320_s4 + $0x78] sm:$0xff] %v1064_v1   ;;  %v1019_v4 = vpack.c.bf16 %v592_v2, %v591_v62  ;;  %v1059_v5 = vpack.c.bf16 %v608_v3, %v607_v63 }
  0xfe   : > { %1071 = vst [vmem:[%s1320_s4 + $0x30] sm:$0xff] %v1019_v4   ;;  %1079 = vst [vmem:[%s1320_s4 + $0x70] sm:$0xff] %v1059_v5  }
  0xff PF: > { %s13_s14 = sadd.s32 1, %s1211_s14   ;;  %s1375_s12 = smov %s1207_s13 }
 0x100   : > { %p10_p5 = scmp.ge.s32.totalorder %s13_s14, 4   ;;  %s1376_s13 = smov %s1378_s15 }
 0x102   :  { %12 = sbr.rel (!%p10_p5) target bundleno = 2 (0x2), region = 68 }

// kernel: dsab_block_forward.5
= control target key start
LH: loop header
LB: loop body
LE: loop exit
PB: predicated region body
PF: predicated region fallthrough
CT: control target
= control target key end

     0   :  { %s1263_s12 = smov 0   ;;  %s1265_s13 = smov 0   ;;  %s1407_s0 = inlined_call_operand.vmem [shape: bf16[512,72], index: 0, kind: input, shape index: {}]   ;;  %s1408_s1 = inlined_call_operand.vmem [shape: bf16[72,128], index: 1, kind: input, shape index: {}]   ;;  %s1409_s2 = inlined_call_operand.vmem [shape: f32[1,128], index: 2, kind: input, shape index: {}]   ;;  %s1410_s3 = inlined_call_operand.vmem [shape: bf16[512,128], index: 3, kind: output, shape index: {}]  }
   0x1   :  { %s1267_s14 = smov 0  }
   0x2 LB: > { %s22_s15 = sadd.s32 1, %s1237_s13  ;;  %p895_p0 = scmp.ge.s32.totalorder %s1241_s14, 1  ;;  %s1241_s14 = sphi %s1267_s14, %s13_s14   ;;  %s1237_s13 = sphi %s1265_s13, %s1412_s13   ;;  %s1233_s12 = sphi %s1263_s12, %s1411_s12  }
   0x3   : > { %p23_p1 = scmp.ge.s32.totalorder %s22_s15, 2  ;;  %p169_p2 = scmp.lt.s32.totalorder %s1241_s14, 3 }
   0x5   : > { %s1414_s15 = smov (%p23_p1, %s22_s15), 0  ;;  %p170_p3 = pnand %p895_p0, %p169_p2 }
   0x6   : > { %s896_s20 = sshll.u32 (!%p170_p3), %s1233_s12, 5 }
   0x7   : > { %173 = sbr.rel (%p170_p3) target bundleno = 263 (0x107), region = 32  ;;  %p204_p4 = scmp.lt.s32.totalorder (!%p170_p3), %s896_s20, 63 }
   0xc   : > { %v1198_v0 = vld [vmem:[%s1408_s1 + $0x20] ss:$0 sps:$4 sm:$0xff]   ;;  %vm430_vm0 = vcmask 1043456   ;;  %v1199_v1 = vld [vmem:[%s1408_s1 + $0x18] sm:$0xff]   ;;  %v1200_v3 = vld [vmem:[%s1408_s1 + $0x10] sm:$0xff]   ;;  %s1416_s20 = smov (!%p204_p4, %s896_s20), 63 }
   0xd   : > { %1172 = vmatprep.subr.msk.bf16.mxu0 %vm430_vm0, %v1198_v0  ;;  %1173 = vmatprep.subr.msk.bf16.mxu1 %vm430_vm0, %v1198_v0  ;;  %v432_v2 = vsel %vm430_vm0, %v1198_v0, 0  ;;  %v1201_v4 = vld [vmem:[%s1408_s1 + $0x8] sm:$0xff]   ;;  %s897_s25 = sshll.u32 %s1416_s20, 2  ;;  %vm381_vm1 = vcmask 588800   ;;  %v1202_v7 = vld [vmem:[%s1408_s1] sm:$0xff]  }
   0xe   : > { %1121 = vmatpush3.bf16.msra.mxu0 %v432_v2  ;;  %1167 = vmatpush3.bf16.msra.mxu1 %v432_v2  ;;  %s1301_s28 = scalar_lea.vmem %s1407_s0, %s897_s25  ;;  %v1341_v22 = vld [vmem:[%s1409_s2] ss:$0 sm:$0xff]  ;;  %s1356_s8 = scalar_lea.vmem %s1410_s3, %s897_s25 }
   0xf   : > { %1122 = vmatprep.subr.bf16.mxu0 %v1199_v1  ;;  %1163 = vmatprep.subr.bf16.mxu1 %v1199_v1  ;;  %v1203_v5 = vld [vmem:[%s1301_s28] sm:$0xff]   ;;  %v1205_v8 = vld [vmem:[%s1301_s28 + $0x8] sm:$0xff]   ;;  %v1207_v10 = vld [vmem:[%s1301_s28 + $0x10] sm:$0xff]  }
  0x10   : > { %v1204_v6 = vld [vmem:[%s1301_s28 + $0x40] sm:$0xff]   ;;  %1130 = vmatprep.mubr.msk.bf16.mxu0 %vm381_vm1, %v1203_v5  ;;  %v1206_v9 = vld [vmem:[%s1301_s28 + $0x48] sm:$0xff]   ;;  %v1208_v11 = vld [vmem:[%s1301_s28 + $0x50] sm:$0xff]  }
  0x11   : > { %1146 = vmatprep.mubr.msk.bf16.mxu1 %vm381_vm1, %v1204_v6  ;;  %v1209_v12 = vld [vmem:[%s1301_s28 + $0x18] sm:$0xff]   ;;  %v1211_v14 = vld [vmem:[%s1301_s28 + $0x20] sm:$0xff]   ;;  %v1213_v16 = vld [vmem:[%s1301_s28 + $0x28] sm:$0xff]  }
  0x12   : > { %1123 = vmatpush3.bf16.msra.mxu0 %v1199_v1  ;;  %1168 = vmatpush3.bf16.msra.mxu1 %v1199_v1  ;;  %v1210_v13 = vld [vmem:[%s1301_s28 + $0x58] sm:$0xff]   ;;  %v1212_v15 = vld [vmem:[%s1301_s28 + $0x60] sm:$0xff]   ;;  %v1214_v17 = vld [vmem:[%s1301_s28 + $0x68] sm:$0xff]  }
  0x13   : > { %1124 = vmatprep.subr.bf16.mxu0 %v1200_v3  ;;  %1164 = vmatprep.subr.bf16.mxu1 %v1200_v3  ;;  %v1215_v18 = vld [vmem:[%s1301_s28 + $0x30] sm:$0xff]   ;;  %v1217_v20 = vld [vmem:[%s1301_s28 + $0x38] sm:$0xff]  }
  0x14   : > { %v1216_v19 = vld [vmem:[%s1301_s28 + $0x70] sm:$0xff]   ;;  %v1218_v21 = vld [vmem:[%s1301_s28 + $0x78] sm:$0xff]  }
  0x16   : > { %1125 = vmatpush3.bf16.msra.mxu0 %v1200_v3  ;;  %1169 = vmatpush3.bf16.msra.mxu1 %v1200_v3 }
  0x17   : > { %1126 = vmatprep.subr.bf16.mxu0 %v1201_v4  ;;  %1165 = vmatprep.subr.bf16.mxu1 %v1201_v4 }
  0x1a   : > { %1127 = vmatpush3.bf16.msra.mxu0 %v1201_v4  ;;  %1170 = vmatpush3.bf16.msra.mxu1 %v1201_v4 }
  0x1b   : > { %1128 = vmatprep.subr.bf16.mxu0 %v1202_v7  ;;  %1166 = vmatprep.subr.bf16.mxu1 %v1202_v7 }
  0x1e   : > { %1129 = vmatpush3.bf16.msra.mxu0 %v1202_v7  ;;  %1171 = vmatpush3.bf16.msra.mxu1 %v1202_v7 }
  0x21   : > { %1131 = vmatmul.mubr.msk.bf16.vlgmr.msra.gmra.mxu0 %vm381_vm1, %v1205_v8  ;;  %1147 = vmatmul.mubr.msk.bf16.vlgmr.msra.gmra.mxu1 %vm381_vm1, %v1206_v9 }
  0x22   : > { %1134 = vmatprep.mubr.msk.bf16.mxu0 %vm381_vm1, %v1207_v10  ;;  %1150 = vmatprep.mubr.msk.bf16.mxu1 %vm381_vm1, %v1208_v11 }
  0x29   : > { %1135 = vmatmul.mubr.msk.bf16.gmra.mxu0 %vm381_vm1, %v1209_v12  ;;  %1151 = vmatmul.mubr.msk.bf16.gmra.mxu1 %vm381_vm1, %v1210_v13 }
  0x2a   : > { %1138 = vmatprep.mubr.msk.bf16.mxu0 %vm381_vm1, %v1211_v14  ;;  %1154 = vmatprep.mubr.msk.bf16.mxu1 %vm381_vm1, %v1212_v15 }
  0x31   : > { %1139 = vmatmul.mubr.msk.bf16.gmra.mxu0 %vm381_vm1, %v1213_v16  ;;  %1155 = vmatmul.mubr.msk.bf16.gmra.mxu1 %vm381_vm1, %v1214_v17 }
  0x32   : > { %1142 = vmatprep.mubr.msk.bf16.mxu0 %vm381_vm1, %v1215_v18  ;;  %1158 = vmatprep.mubr.msk.bf16.mxu1 %vm381_vm1, %v1216_v19 }
  0x39   : > { %1143 = vmatmul.mubr.msk.bf16.gmra.mxu0 %vm381_vm1, %v1217_v20  ;;  %1159 = vmatmul.mubr.msk.bf16.gmra.mxu1 %vm381_vm1, %v1218_v21 }
  0xe1   : > { %v1132_v23 = vpop.f32.mrf.mxu0  ;;  %v1148_v24 = vpop.f32.mrf.mxu1 }
  0xe2   : > { %v477_v25 = vadd.f32 %v1132_v23, %v1341_v22  ;;  %v541_v26 = vadd.f32 %v1148_v24, %v1341_v22 }
  0xe3   : > { %v468_v27 = vpop.f32.mrf.mxu0  ;;  %v532_v28 = vpop.f32.mrf.mxu1 }
  0xe4   : > { %v469_v29 = vadd.f32 %v1341_v22, %v468_v27  ;;  %v533_v30 = vadd.f32 %v1341_v22, %v532_v28  ;;  %v597_v35 = vmax.f32 %v477_v25, 0.0  ;;  %v613_v36 = vmax.f32 %v541_v26, 0.0 }
  0xe5   : > { %v1133_v31 = vpop.f32.mrf.mxu0  ;;  %v1149_v32 = vpop.f32.mrf.mxu1 }
  0xe6   : > { %v480_v33 = vadd.f32 %v1133_v31, %v1341_v22  ;;  %v544_v34 = vadd.f32 %v1149_v32, %v1341_v22  ;;  %v595_v43 = vmax.f32 %v469_v29, 0.0  ;;  %v611_v44 = vmax.f32 %v533_v30, 0.0 }
  0xe7   : > { %v471_v37 = vpop.f32.mrf.mxu0  ;;  %v535_v38 = vpop.f32.mrf.mxu1 }
  0xe8   : > { %v598_v39 = vmax.f32 %v480_v33, 0.0  ;;  %v614_v40 = vmax.f32 %v544_v34, 0.0  ;;  %v472_v41 = vadd.f32 %v1341_v22, %v471_v37  ;;  %v536_v42 = vadd.f32 %v1341_v22, %v535_v38 }
  0xe9   : > { %v1136_v45 = vpop.f32.mrf.mxu0  ;;  %v1152_v46 = vpop.f32.mrf.mxu1 }
  0xea   : > { %v1012_v47 = vpack.c.bf16 %v598_v39, %v597_v35  ;;  %v1052_v48 = vpack.c.bf16 %v614_v40, %v613_v36  ;;  %v596_v49 = vmax.f32 %v472_v41, 0.0  ;;  %v612_v50 = vmax.f32 %v536_v42, 0.0 }
  0xeb   : > { %v493_v51 = vadd.f32 %v1136_v45, %v1341_v22  ;;  %v557_v52 = vadd.f32 %v1152_v46, %v1341_v22  ;;  %v484_v53 = vpop.f32.mrf.mxu0  ;;  %v548_v54 = vpop.f32.mrf.mxu1 }
  0xec   : > { %1084 = vst [vmem:[%s1356_s8 + $0x8] sm:$0xff] %v1012_v47   ;;  %1092 = vst [vmem:[%s1356_s8 + $0x48] sm:$0xff] %v1052_v48   ;;  %v1007_v55 = vpack.c.bf16 %v596_v49, %v595_v43  ;;  %v1047_v56 = vpack.c.bf16 %v612_v50, %v611_v44  ;;  %v485_v57 = vadd.f32 %v1341_v22, %v484_v53 }
  0xed   : > { %v549_v58 = vadd.f32 %v1341_v22, %v548_v54  ;;  %v1137_v59 = vpop.f32.mrf.mxu0  ;;  %v1153_v60 = vpop.f32.mrf.mxu1  ;;  %v601_v63 = vmax.f32 %v493_v51, 0.0  ;;  %v617_v0 = vmax.f32 %v557_v52, 0.0 }
  0xee   : > { %1008 = vst [vmem:[%s1356_s8] sm:$0xff] %v1007_v55   ;;  %1091 = vst [vmem:[%s1356_s8 + $0x40] sm:$0xff] %v1047_v56   ;;  %v496_v61 = vadd.f32 %v1137_v59, %v1341_v22  ;;  %v560_v62 = vadd.f32 %v1153_v60, %v1341_v22  ;;  %v599_v7 = vmax.f32 %v485_v57, 0.0 }
  0xef   : > { %v487_v1 = vpop.f32.mrf.mxu0  ;;  %v551_v2 = vpop.f32.mrf.mxu1  ;;  %v615_v8 = vmax.f32 %v549_v58, 0.0 }
  0xf0   : > { %v602_v3 = vmax.f32 %v496_v61, 0.0  ;;  %v618_v4 = vmax.f32 %v560_v62, 0.0  ;;  %v488_v5 = vadd.f32 %v1341_v22, %v487_v1  ;;  %v552_v6 = vadd.f32 %v1341_v22, %v551_v2 }
  0xf1   : > { %v1140_v9 = vpop.f32.mrf.mxu0  ;;  %v1156_v10 = vpop.f32.mrf.mxu1 }
  0xf2   : > { %v1022_v11 = vpack.c.bf16 %v602_v3, %v601_v63  ;;  %v1062_v12 = vpack.c.bf16 %v618_v4, %v617_v0  ;;  %v600_v13 = vmax.f32 %v488_v5, 0.0  ;;  %v616_v14 = vmax.f32 %v552_v6, 0.0 }
  0xf3   : > { %v509_v15 = vadd.f32 %v1140_v9, %v1341_v22  ;;  %v573_v16 = vadd.f32 %v1156_v10, %v1341_v22  ;;  %v500_v17 = vpop.f32.mrf.mxu0  ;;  %v564_v18 = vpop.f32.mrf.mxu1 }
  0xf4   : > { %1086 = vst [vmem:[%s1356_s8 + $0x18] sm:$0xff] %v1022_v11   ;;  %1094 = vst [vmem:[%s1356_s8 + $0x58] sm:$0xff] %v1062_v12   ;;  %v1017_v19 = vpack.c.bf16 %v600_v13, %v599_v7  ;;  %v1057_v20 = vpack.c.bf16 %v616_v14, %v615_v8  ;;  %v501_v21 = vadd.f32 %v1341_v22, %v500_v17 }
  0xf5   : > { %v565_v23 = vadd.f32 %v1341_v22, %v564_v18  ;;  %v1141_v24 = vpop.f32.mrf.mxu0  ;;  %v1157_v25 = vpop.f32.mrf.mxu1  ;;  %v605_v28 = vmax.f32 %v509_v15, 0.0  ;;  %v621_v29 = vmax.f32 %v573_v16, 0.0 }
  0xf6   : > { %1085 = vst [vmem:[%s1356_s8 + $0x10] sm:$0xff] %v1017_v19   ;;  %1093 = vst [vmem:[%s1356_s8 + $0x50] sm:$0xff] %v1057_v20   ;;  %v512_v26 = vadd.f32 %v1141_v24, %v1341_v22  ;;  %v576_v27 = vadd.f32 %v1157_v25, %v1341_v22  ;;  %v603_v36 = vmax.f32 %v501_v21, 0.0 }
  0xf7   : > { %v503_v30 = vpop.f32.mrf.mxu0  ;;  %v567_v31 = vpop.f32.mrf.mxu1  ;;  %v619_v37 = vmax.f32 %v565_v23, 0.0 }
  0xf8   : > { %v606_v32 = vmax.f32 %v512_v26, 0.0  ;;  %v622_v33 = vmax.f32 %v576_v27, 0.0  ;;  %v504_v34 = vadd.f32 %v1341_v22, %v503_v30  ;;  %v568_v35 = vadd.f32 %v1341_v22, %v567_v31 }
  0xf9   : > { %v1144_v38 = vpop.f32.mrf.mxu0  ;;  %v1160_v39 = vpop.f32.mrf.mxu1 }
  0xfa   : > { %v1032_v40 = vpack.c.bf16 %v606_v32, %v605_v28  ;;  %v1072_v41 = vpack.c.bf16 %v622_v33, %v621_v29  ;;  %v604_v42 = vmax.f32 %v504_v34, 0.0  ;;  %v620_v43 = vmax.f32 %v568_v35, 0.0 }
  0xfb   : > { %v525_v44 = vadd.f32 %v1144_v38, %v1341_v22  ;;  %v589_v45 = vadd.f32 %v1160_v39, %v1341_v22  ;;  %v516_v46 = vpop.f32.mrf.mxu0  ;;  %v580_v47 = vpop.f32.mrf.mxu1 }
  0xfc   : > { %1088 = vst [vmem:[%s1356_s8 + $0x28] sm:$0xff] %v1032_v40   ;;  %1096 = vst [vmem:[%s1356_s8 + $0x68] sm:$0xff] %v1072_v41   ;;  %v1027_v48 = vpack.c.bf16 %v604_v42, %v603_v36  ;;  %v1067_v49 = vpack.c.bf16 %v620_v43, %v619_v37  ;;  %v517_v50 = vadd.f32 %v1341_v22, %v516_v46 }
  0xfd   : > { %v581_v51 = vadd.f32 %v1341_v22, %v580_v47  ;;  %v1145_v52 = vpop.f32.mrf.mxu0  ;;  %v1161_v53 = vpop.f32.mrf.mxu1  ;;  %v609_v56 = vmax.f32 %v525_v44, 0.0  ;;  %v625_v57 = vmax.f32 %v589_v45, 0.0 }
  0xfe   : > { %1087 = vst [vmem:[%s1356_s8 + $0x20] sm:$0xff] %v1027_v48   ;;  %1095 = vst [vmem:[%s1356_s8 + $0x60] sm:$0xff] %v1067_v49   ;;  %v528_v54 = vadd.f32 %v1145_v52, %v1341_v22  ;;  %v592_v55 = vadd.f32 %v1161_v53, %v1341_v22  ;;  %v607_v0 = vmax.f32 %v517_v50, 0.0 }
  0xff   : > { %v519_v58 = vpop.f32.mrf.mxu0  ;;  %v583_v59 = vpop.f32.mrf.mxu1  ;;  %v623_v1 = vmax.f32 %v581_v51, 0.0 }
 0x100   : > { %v610_v60 = vmax.f32 %v528_v54, 0.0  ;;  %v626_v61 = vmax.f32 %v592_v55, 0.0  ;;  %v520_v62 = vadd.f32 %v1341_v22, %v519_v58  ;;  %v584_v63 = vadd.f32 %v1341_v22, %v583_v59 }
 0x102   : > { %v1042_v2 = vpack.c.bf16 %v610_v60, %v609_v56  ;;  %v1082_v3 = vpack.c.bf16 %v626_v61, %v625_v57  ;;  %v608_v4 = vmax.f32 %v520_v62, 0.0  ;;  %v624_v5 = vmax.f32 %v584_v63, 0.0 }
 0x104   : > { %1090 = vst [vmem:[%s1356_s8 + $0x38] sm:$0xff] %v1042_v2   ;;  %1098 = vst [vmem:[%s1356_s8 + $0x78] sm:$0xff] %v1082_v3   ;;  %v1037_v6 = vpack.c.bf16 %v608_v4, %v607_v0  ;;  %v1077_v7 = vpack.c.bf16 %v624_v5, %v623_v1 }
 0x106   : > { %1089 = vst [vmem:[%s1356_s8 + $0x30] sm:$0xff] %v1037_v6   ;;  %1097 = vst [vmem:[%s1356_s8 + $0x70] sm:$0xff] %v1077_v7  }
 0x107 PF: > { %s13_s14 = sadd.s32 1, %s1241_s14   ;;  %s1411_s12 = smov %s1237_s13 }
 0x108   : > { %p10_p5 = scmp.ge.s32.totalorder %s13_s14, 4   ;;  %s1412_s13 = smov %s1414_s15 }
 0x10a   :  { %12 = sbr.rel (!%p10_p5) target bundleno = 2 (0x2), region = 68 }

// kernel: dsab_block_forward.7
= control target key start
LH: loop header
LB: loop body
LE: loop exit
PB: predicated region body
PF: predicated region fallthrough
CT: control target
= control target key end

     0   :  { %s2826_s13 = smov 0   ;;  %s2828_s14 = smov 0   ;;  %s3329_s0 = inlined_call_operand.vmem [shape: bf16[512,4], index: 0, kind: input, shape index: {}]   ;;  %s3330_s1 = inlined_call_operand.vmem [shape: bf16[512,8], index: 1, kind: input, shape index: {}]   ;;  %s3331_s2 = inlined_call_operand.vmem [shape: bf16[512,8], index: 2, kind: input, shape index: {}]   ;;  %s3332_s3 = inlined_call_operand.vmem [shape: bf16[512,8], index: 3, kind: input, shape index: {}]   ;;  %s3333_s4 = inlined_call_operand.vmem [shape: bf16[4,128], index: 4, kind: input, shape index: {}]   ;;  %s3334_s5 = inlined_call_operand.vmem [shape: bf16[8,128], index: 5, kind: input, shape index: {}]   ;;  %s3335_s6 = inlined_call_operand.vmem [shape: bf16[8,128], index: 6, kind: input, shape index: {}]   ;;  %s3336_s7 = inlined_call_operand.vmem [shape: bf16[8,128], index: 7, kind: input, shape index: {}]   ;;  %s3337_s8 = inlined_call_operand.vmem [shape: f32[1,128], index: 8, kind: input, shape index: {}]   ;;  %s3338_s9 = inlined_call_operand.vmem [shape: f32[512,128], index: 9, kind: input, shape index: {}]   ;;  %s3339_s10 = inlined_call_operand.vmem [shape: f32[512,128], index: 10, kind: output, shape index: {}]  }
   0x1   :  { %s2830_s15 = smov 0  }
   0x2 LB: > { %s29_s16 = sadd.s32 1, %s2765_s14  ;;  %p2307_p0 = scmp.ge.s32.totalorder %s2769_s15, 1  ;;  %s2769_s15 = sphi %s2830_s15, %s20_s15   ;;  %s2765_s14 = sphi %s2828_s14, %s3369_s14   ;;  %s2761_s13 = sphi %s2826_s13, %s3368_s13  }
   0x3   : > { %p30_p1 = scmp.ge.s32.totalorder %s29_s16, 2  ;;  %p420_p2 = scmp.lt.s32.totalorder %s2769_s15, 3 }
   0x5   : > { %s3371_s16 = smov (%p30_p1, %s29_s16), 0  ;;  %p421_p3 = pnand %p2307_p0, %p420_p2 }
   0x7   : > { %424 = sbr.rel (%p421_p3) target bundleno = 350 (0x15e), region = 60 }
   0xc   : > { %v630_v0 = vld [vmem:[%s3334_s5] sm:$0xf]  ;;  %vm760_vm0 = vcmask 1043456   ;;  %vm1054_vm1 = vcmask 1041408   ;;  %s2308_s21 = sshll.u32 %s2761_s13, 5  ;;  %vm711_vm2 = vcmask 64512  }
   0xd   : > { %v597_v1 = vld [vmem:[%s3333_s4] sm:$0x3]  ;;  %2655 = vmatprep.subr.msk.bf16.mxu0 %vm760_vm0, %v630_v0  ;;  %v762_v2 = vsel %vm760_vm0, %v630_v0, 0  ;;  %p504_p4 = scmp.lt.s32.totalorder %s2308_s21, 63  ;;  %vm1005_vm3 = vcmask 31744  }
   0xe   : > { %2656 = vmatprep.subr.msk.bf16.mxu1 %vm1054_vm1, %v597_v1  ;;  %v1056_v3 = vsel %vm1054_vm1, %v597_v1, 0  ;;  %2520 = vmatpush3.bf16.msra.mxu0 %v762_v2  ;;  %v1251_v4 = vld [vmem:[%s3335_s6] sm:$0xf] }
   0xf   : > { %2554 = vmatpush3.bf16.msra.mxu1 %v1056_v3  ;;  %v1608_v5 = vld [vmem:[%s3336_s7] sm:$0xf]  ;;  %2657 = vmatprep.subr.msk.bf16.mxu0 %vm760_vm0, %v1251_v4  ;;  %s3373_s21 = smov (!%p504_p4, %s2308_s21), 63  ;;  %v1381_v9 = vsel %vm760_vm0, %v1251_v4, 0 }
  0x10   : > { %2658 = vmatprep.subr.msk.bf16.mxu1 %vm760_vm0, %v1608_v5  ;;  %s2863_s26 = sshll.u32 %s3373_s21, 2  ;;  %v1738_v11 = vsel %vm760_vm0, %v1608_v5, 0  ;;  %s2317_s23 = sshll.u32 %s3373_s21, 3 }
  0x11   : > { %s2869_s29 = scalar_lea.vmem %s3330_s1, %s2863_s26  ;;  %s2875_s12 = scalar_lea.vmem %s3329_s0, %s2863_s26 }
  0x12   : > { %v2683_v6 = vld [vmem:[%s2869_s29] sm:$0xff]   ;;  %v2685_v8 = vld [vmem:[%s2869_s29 + $0x8] sm:$0xff]   ;;  %v2687_v12 = vld [vmem:[%s2869_s29 + $0x10] sm:$0xff]   ;;  %s2920_s18 = scalar_lea.vmem %s3331_s2, %s2863_s26  ;;  %s2927_s22 = scalar_lea.vmem %s3332_s3, %s2863_s26 }
  0x13   : > { %v2684_v7 = vld [vmem:[%s2875_s12] sm:$0xff]   ;;  %2521 = vmatprep.mubr.msk.bf16.mxu0 %vm711_vm2, %v2683_v6  ;;  %v2686_v10 = vld [vmem:[%s2875_s12 + $0x8] sm:$0xff]   ;;  %v2688_v13 = vld [vmem:[%s2875_s12 + $0x10] sm:$0xff]   ;;  %s3159_s28 = scalar_lea.vmem %s3338_s9, %s2317_s23  ;;  %s3173_s30 = scalar_lea.vmem %s3339_s10, %s2317_s23 }
  0x14   : > { %2555 = vmatprep.mubr.msk.bf16.mxu1 %vm1005_vm3, %v2684_v7  ;;  %2522 = vmatmul.mubr.msk.bf16.vlgmr.msra.gmra.mxu0 %vm711_vm2, %v2685_v8  ;;  %v2689_v14 = vld [vmem:[%s2869_s29 + $0x18] sm:$0xff]   ;;  %v2691_v16 = vld [vmem:[%s2869_s29 + $0x20] sm:$0xff]   ;;  %v2693_v18 = vld [vmem:[%s2869_s29 + $0x28] sm:$0xff]  }
  0x15   : > { %2556 = vmatmul.mubr.msk.bf16.vlgmr.msra.gmra.mxu1 %vm1005_vm3, %v2686_v10  ;;  %2588 = vmatpush3.bf16.msra.mxu0 %v1381_v9  ;;  %v2690_v15 = vld [vmem:[%s2875_s12 + $0x18] sm:$0xff]   ;;  %v2692_v17 = vld [vmem:[%s2875_s12 + $0x20] sm:$0xff]   ;;  %v2694_v19 = vld [vmem:[%s2875_s12 + $0x28] sm:$0xff]  }
  0x16   : > { %2622 = vmatpush3.bf16.msra.mxu1 %v1738_v11  ;;  %2525 = vmatprep.mubr.msk.bf16.mxu0 %vm711_vm2, %v2687_v12  ;;  %v2695_v20 = vld [vmem:[%s2869_s29 + $0x30] sm:$0xff]   ;;  %v2697_v22 = vld [vmem:[%s2869_s29 + $0x38] sm:$0xff]   ;;  %v2699_v24 = vld [vmem:[%s2869_s29 + $0x40] sm:$0xff]  }
  0x17   : > { %2559 = vmatprep.mubr.msk.bf16.mxu1 %vm1005_vm3, %v2688_v13  ;;  %v2696_v21 = vld [vmem:[%s2875_s12 + $0x30] sm:$0xff]   ;;  %v2698_v23 = vld [vmem:[%s2875_s12 + $0x38] sm:$0xff]   ;;  %v2700_v25 = vld [vmem:[%s2875_s12 + $0x40] sm:$0xff]  }
  0x18   : > { %v2701_v26 = vld [vmem:[%s2869_s29 + $0x48] sm:$0xff]   ;;  %v2703_v28 = vld [vmem:[%s2869_s29 + $0x50] sm:$0xff]   ;;  %v2705_v30 = vld [vmem:[%s2869_s29 + $0x58] sm:$0xff]  }
  0x19   : > { %v2702_v27 = vld [vmem:[%s2875_s12 + $0x48] sm:$0xff]   ;;  %v2704_v29 = vld [vmem:[%s2875_s12 + $0x50] sm:$0xff]   ;;  %v2706_v31 = vld [vmem:[%s2875_s12 + $0x58] sm:$0xff]  }
  0x1a   : > { %v2707_v32 = vld [vmem:[%s2869_s29 + $0x60] sm:$0xff]   ;;  %v2709_v34 = vld [vmem:[%s2869_s29 + $0x68] sm:$0xff]   ;;  %v2711_v36 = vld [vmem:[%s2869_s29 + $0x70] sm:$0xff]  }
  0x1b   : > { %v2708_v33 = vld [vmem:[%s2875_s12 + $0x60] sm:$0xff]   ;;  %v2710_v35 = vld [vmem:[%s2875_s12 + $0x68] sm:$0xff]   ;;  %v2712_v37 = vld [vmem:[%s2875_s12 + $0x70] sm:$0xff]  }
  0x1c   : > { %2526 = vmatmul.mubr.msk.bf16.gmra.mxu0 %vm711_vm2, %v2689_v14  ;;  %v2713_v38 = vld [vmem:[%s2869_s29 + $0x78] sm:$0xff]   ;;  %v2715_v40 = vld [vmem:[%s2920_s18] sm:$0xff]   ;;  %v2717_v42 = vld [vmem:[%s2920_s18 + $0x8] sm:$0xff]  }
  0x1d   : > { %2560 = vmatmul.mubr.msk.bf16.gmra.mxu1 %vm1005_vm3, %v2690_v15  ;;  %2529 = vmatprep.mubr.msk.bf16.mxu0 %vm711_vm2, %v2691_v16  ;;  %v2714_v39 = vld [vmem:[%s2875_s12 + $0x78] sm:$0xff]   ;;  %v2716_v41 = vld [vmem:[%s2927_s22] sm:$0xff]   ;;  %v2718_v43 = vld [vmem:[%s2927_s22 + $0x8] sm:$0xff]  }
  0x1e   : > { %2563 = vmatprep.mubr.msk.bf16.mxu1 %vm1005_vm3, %v2692_v17  ;;  %v2719_v44 = vld [vmem:[%s2920_s18 + $0x10] sm:$0xff]   ;;  %v2721_v46 = vld [vmem:[%s2920_s18 + $0x18] sm:$0xff]   ;;  %v2723_v48 = vld [vmem:[%s2920_s18 + $0x20] sm:$0xff]  }
  0x1f   : > { %v2720_v45 = vld [vmem:[%s2927_s22 + $0x10] sm:$0xff]   ;;  %v2722_v47 = vld [vmem:[%s2927_s22 + $0x18] sm:$0xff]   ;;  %v2724_v49 = vld [vmem:[%s2927_s22 + $0x20] sm:$0xff]  }
  0x20   : > { %v2725_v50 = vld [vmem:[%s2920_s18 + $0x28] sm:$0xff]   ;;  %v2727_v52 = vld [vmem:[%s2920_s18 + $0x30] sm:$0xff]   ;;  %v2729_v54 = vld [vmem:[%s2920_s18 + $0x38] sm:$0xff]  }
  0x21   : > { %v2726_v51 = vld [vmem:[%s2927_s22 + $0x28] sm:$0xff]   ;;  %v2728_v53 = vld [vmem:[%s2927_s22 + $0x30] sm:$0xff]   ;;  %v2730_v55 = vld [vmem:[%s2927_s22 + $0x38] sm:$0xff]  }
  0x22   : > { %v2731_v56 = vld [vmem:[%s2920_s18 + $0x40] sm:$0xff]   ;;  %v2733_v58 = vld [vmem:[%s2920_s18 + $0x48] sm:$0xff]   ;;  %v2735_v60 = vld [vmem:[%s2920_s18 + $0x50] sm:$0xff]  }
  0x23   : > { %v2732_v57 = vld [vmem:[%s2927_s22 + $0x40] sm:$0xff]   ;;  %v2734_v59 = vld [vmem:[%s2927_s22 + $0x48] sm:$0xff]   ;;  %v2736_v61 = vld [vmem:[%s2927_s22 + $0x50] sm:$0xff]  }
  0x24   : > { %2530 = vmatmul.mubr.msk.bf16.gmra.mxu0 %vm711_vm2, %v2693_v18  ;;  %v2737_v62 = vld [vmem:[%s2920_s18 + $0x58] sm:$0xff]   ;;  %v2739_v0 = vld [vmem:[%s2920_s18 + $0x60] sm:$0xff]   ;;  %v2741_v2 = vld [vmem:[%s2920_s18 + $0x68] sm:$0xff]  }
  0x25   : > { %2564 = vmatmul.mubr.msk.bf16.gmra.mxu1 %vm1005_vm3, %v2694_v19  ;;  %2533 = vmatprep.mubr.msk.bf16.mxu0 %vm711_vm2, %v2695_v20  ;;  %v2738_v63 = vld [vmem:[%s2927_s22 + $0x58] sm:$0xff]   ;;  %v2740_v1 = vld [vmem:[%s2927_s22 + $0x60] sm:$0xff]   ;;  %v2742_v3 = vld [vmem:[%s2927_s22 + $0x68] sm:$0xff]  }
  0x26   : > { %2567 = vmatprep.mubr.msk.bf16.mxu1 %vm1005_vm3, %v2696_v21  ;;  %v2743_v4 = vld [vmem:[%s2920_s18 + $0x70] sm:$0xff]   ;;  %v2745_v6 = vld [vmem:[%s2920_s18 + $0x78] sm:$0xff]  }
  0x27   : > { %v2744_v5 = vld [vmem:[%s2927_s22 + $0x70] sm:$0xff]   ;;  %v2746_v7 = vld [vmem:[%s2927_s22 + $0x78] sm:$0xff]  }
  0x2c   : > { %2534 = vmatmul.mubr.msk.bf16.gmra.mxu0 %vm711_vm2, %v2697_v22 }
  0x2d   : > { %2568 = vmatmul.mubr.msk.bf16.gmra.mxu1 %vm1005_vm3, %v2698_v23  ;;  %2537 = vmatprep.mubr.msk.bf16.mxu0 %vm711_vm2, %v2699_v24 }
  0x2e   : > { %2571 = vmatprep.mubr.msk.bf16.mxu1 %vm1005_vm3, %v2700_v25 }
  0x34   : > { %2538 = vmatmul.mubr.msk.bf16.gmra.mxu0 %vm711_vm2, %v2701_v26 }
  0x35   : > { %2572 = vmatmul.mubr.msk.bf16.gmra.mxu1 %vm1005_vm3, %v2702_v27  ;;  %2541 = vmatprep.mubr.msk.bf16.mxu0 %vm711_vm2, %v2703_v28 }
  0x36   : > { %2575 = vmatprep.mubr.msk.bf16.mxu1 %vm1005_vm3, %v2704_v29 }
  0x3c   : > { %2542 = vmatmul.mubr.msk.bf16.gmra.mxu0 %vm711_vm2, %v2705_v30 }
  0x3d   : > { %2576 = vmatmul.mubr.msk.bf16.gmra.mxu1 %vm1005_vm3, %v2706_v31  ;;  %2545 = vmatprep.mubr.msk.bf16.mxu0 %vm711_vm2, %v2707_v32 }
  0x3e   : > { %2579 = vmatprep.mubr.msk.bf16.mxu1 %vm1005_vm3, %v2708_v33 }
  0x44   : > { %2546 = vmatmul.mubr.msk.bf16.gmra.mxu0 %vm711_vm2, %v2709_v34 }
  0x45   : > { %2580 = vmatmul.mubr.msk.bf16.gmra.mxu1 %vm1005_vm3, %v2710_v35  ;;  %2549 = vmatprep.mubr.msk.bf16.mxu0 %vm711_vm2, %v2711_v36 }
  0x46   : > { %2583 = vmatprep.mubr.msk.bf16.mxu1 %vm1005_vm3, %v2712_v37 }
  0x4c   : > { %2550 = vmatmul.mubr.msk.bf16.gmra.mxu0 %vm711_vm2, %v2713_v38 }
  0x4d   : > { %2584 = vmatmul.mubr.msk.bf16.gmra.mxu1 %vm1005_vm3, %v2714_v39  ;;  %2589 = vmatprep.mubr.msk.bf16.mxu0 %vm711_vm2, %v2715_v40 }
  0x4e   : > { %2623 = vmatprep.mubr.msk.bf16.mxu1 %vm711_vm2, %v2716_v41 }
  0x54   : > { %2590 = vmatmul.mubr.msk.bf16.vlgmr.msra.gmra.mxu0 %vm711_vm2, %v2717_v42 }
  0x55   : > { %2624 = vmatmul.mubr.msk.bf16.vlgmr.msra.gmra.mxu1 %vm711_vm2, %v2718_v43  ;;  %2593 = vmatprep.mubr.msk.bf16.mxu0 %vm711_vm2, %v2719_v44 }
  0x56   : > { %2627 = vmatprep.mubr.msk.bf16.mxu1 %vm711_vm2, %v2720_v45 }
  0x5c   : > { %2594 = vmatmul.mubr.msk.bf16.gmra.mxu0 %vm711_vm2, %v2721_v46 }
  0x5d   : > { %2628 = vmatmul.mubr.msk.bf16.gmra.mxu1 %vm711_vm2, %v2722_v47  ;;  %2597 = vmatprep.mubr.msk.bf16.mxu0 %vm711_vm2, %v2723_v48 }
  0x5e   : > { %2631 = vmatprep.mubr.msk.bf16.mxu1 %vm711_vm2, %v2724_v49 }
  0x64   : > { %2598 = vmatmul.mubr.msk.bf16.gmra.mxu0 %vm711_vm2, %v2725_v50 }
  0x65   : > { %2632 = vmatmul.mubr.msk.bf16.gmra.mxu1 %vm711_vm2, %v2726_v51  ;;  %2601 = vmatprep.mubr.msk.bf16.mxu0 %vm711_vm2, %v2727_v52 }
  0x66   : > { %2635 = vmatprep.mubr.msk.bf16.mxu1 %vm711_vm2, %v2728_v53 }
  0x6c   : > { %2602 = vmatmul.mubr.msk.bf16.gmra.mxu0 %vm711_vm2, %v2729_v54 }
  0x6d   : > { %2636 = vmatmul.mubr.msk.bf16.gmra.mxu1 %vm711_vm2, %v2730_v55  ;;  %2605 = vmatprep.mubr.msk.bf16.mxu0 %vm711_vm2, %v2731_v56 }
  0x6e   : > { %2639 = vmatprep.mubr.msk.bf16.mxu1 %vm711_vm2, %v2732_v57 }
  0x74   : > { %2606 = vmatmul.mubr.msk.bf16.gmra.mxu0 %vm711_vm2, %v2733_v58 }
  0x75   : > { %2640 = vmatmul.mubr.msk.bf16.gmra.mxu1 %vm711_vm2, %v2734_v59  ;;  %2609 = vmatprep.mubr.msk.bf16.mxu0 %vm711_vm2, %v2735_v60 }
  0x76   : > { %2643 = vmatprep.mubr.msk.bf16.mxu1 %vm711_vm2, %v2736_v61 }
  0x7c   : > { %2610 = vmatmul.mubr.msk.bf16.gmra.mxu0 %vm711_vm2, %v2737_v62 }
  0x7d   : > { %2644 = vmatmul.mubr.msk.bf16.gmra.mxu1 %vm711_vm2, %v2738_v63  ;;  %2613 = vmatprep.mubr.msk.bf16.mxu0 %vm711_vm2, %v2739_v0 }
  0x7e   : > { %2647 = vmatprep.mubr.msk.bf16.mxu1 %vm711_vm2, %v2740_v1 }
  0x84   : > { %2614 = vmatmul.mubr.msk.bf16.gmra.mxu0 %vm711_vm2, %v2741_v2 }
  0x85   : > { %2648 = vmatmul.mubr.msk.bf16.gmra.mxu1 %vm711_vm2, %v2742_v3  ;;  %2617 = vmatprep.mubr.msk.bf16.mxu0 %vm711_vm2, %v2743_v4 }
  0x86   : > { %2651 = vmatprep.mubr.msk.bf16.mxu1 %vm711_vm2, %v2744_v5 }
  0x8c   : > { %2618 = vmatmul.mubr.msk.bf16.gmra.mxu0 %vm711_vm2, %v2745_v6 }
  0x8d   : > { %2652 = vmatmul.mubr.msk.bf16.gmra.mxu1 %vm711_vm2, %v2746_v7 }
  0xd4   : > { %v3019_v8 = vpop.f32.mrf.mxu0 }
  0xd5   : > { %v2557_v9 = vpop.f32.mrf.mxu1 }
  0xd6   : > { %v3021_v10 = vpop.f32.mrf.mxu0  ;;  %v1101_v7 = vadd.f32 %v2557_v9, %v3019_v8 }
  0xd7   : > { %v3023_v11 = vpop.f32.mrf.mxu1 }
  0xd8   : > { %v3025_v12 = vpop.f32.mrf.mxu0 }
  0xd9   : > { %v3027_v13 = vpop.f32.mrf.mxu1 }
  0xda   : > { %v3029_v14 = vpop.f32.mrf.mxu0 }
  0xdb   : > { %v3031_v15 = vpop.f32.mrf.mxu1 }
  0xdc   : > { %v3033_v16 = vpop.f32.mrf.mxu0 }
  0xdd   : > { %v3035_v17 = vpop.f32.mrf.mxu1 }
  0xde   : > { %v3037_v18 = vpop.f32.mrf.mxu0 }
  0xdf   : > { %v3039_v19 = vpop.f32.mrf.mxu1 }
  0xe0   : > { %v3041_v20 = vpop.f32.mrf.mxu0 }
  0xe1   : > { %v3043_v21 = vpop.f32.mrf.mxu1 }
  0xe2   : > { %v3045_v22 = vpop.f32.mrf.mxu0 }
  0xe3   : > { %v3047_v23 = vpop.f32.mrf.mxu1 }
  0xe4   : > { %v3049_v24 = vpop.f32.mrf.mxu0 }
  0xe5   : > { %v3051_v25 = vpop.f32.mrf.mxu1 }
  0xe6   : > { %v3053_v26 = vpop.f32.mrf.mxu0 }
  0xe7   : > { %v3055_v27 = vpop.f32.mrf.mxu1 }
  0xe8   : > { %v3057_v28 = vpop.f32.mrf.mxu0 }
  0xe9   : > { %v3059_v29 = vpop.f32.mrf.mxu1 }
  0xea   : > { %v3061_v30 = vpop.f32.mrf.mxu0 }
  0xeb   : > { %v3063_v31 = vpop.f32.mrf.mxu1 }
  0xec   : > { %v3065_v32 = vpop.f32.mrf.mxu0 }
  0xed   : > { %v3067_v33 = vpop.f32.mrf.mxu1 }
  0xee   : > { %v3069_v34 = vpop.f32.mrf.mxu0 }
  0xef   : > { %v3071_v35 = vpop.f32.mrf.mxu1 }
  0xf0   : > { %v3073_v36 = vpop.f32.mrf.mxu0 }
  0xf1   : > { %v3075_v37 = vpop.f32.mrf.mxu1 }
  0xf2   : > { %v3077_v38 = vpop.f32.mrf.mxu0 }
  0xf3   : > { %v3079_v39 = vpop.f32.mrf.mxu1 }
  0xf4   : > { %v3081_v40 = vpop.f32.mrf.mxu0 }
  0xf5   : > { %v3083_v41 = vpop.f32.mrf.mxu1 }
  0xf6   : > { %v3085_v42 = vpop.f32.mrf.mxu0 }
  0xf7   : > { %v3087_v43 = vpop.f32.mrf.mxu1 }
  0xf8   : > { %v3089_v44 = vpop.f32.mrf.mxu0 }
  0xf9   : > { %v3091_v45 = vpop.f32.mrf.mxu1 }
  0xfa   : > { %v3093_v46 = vpop.f32.mrf.mxu0 }
  0xfb   : > { %v3095_v47 = vpop.f32.mrf.mxu1 }
  0xfc   : > { %v3097_v48 = vpop.f32.mrf.mxu0 }
  0xfd   : > { %v3099_v49 = vpop.f32.mrf.mxu1 }
  0xfe   : > { %v3101_v50 = vpop.f32.mrf.mxu0 }
  0xff   : > { %v3103_v51 = vpop.f32.mrf.mxu1 }
 0x100   : > { %v3105_v52 = vpop.f32.mrf.mxu0 }
 0x101   : > { %v3107_v53 = vpop.f32.mrf.mxu1 }
 0x102   : > { %v3109_v54 = vpop.f32.mrf.mxu0 }
 0x103   : > { %v3111_v55 = vpop.f32.mrf.mxu1 }
 0x104   : > { %v3113_v56 = vpop.f32.mrf.mxu0 }
 0x105   : > { %v3115_v57 = vpop.f32.mrf.mxu1 }
 0x106   : > { %v3117_v58 = vpop.f32.mrf.mxu0 }
 0x107   : > { %3340 = vst [vmem:[#allocation2_spill] sm:$0xff] %v3117_v58  ;;  %v3119_v59 = vpop.f32.mrf.mxu1 }
 0x108   : > { %3341 = vst [vmem:[#allocation3_spill] sm:$0xff] %v3119_v59  ;;  %v3121_v60 = vpop.f32.mrf.mxu0 }
 0x109   : > { %3342 = vst [vmem:[#allocation4_spill] sm:$0xff] %v3121_v60  ;;  %v3123_v61 = vpop.f32.mrf.mxu1 }
 0x10a   : > { %3343 = vst [vmem:[#allocation5_spill] sm:$0xff] %v3123_v61  ;;  %v3125_v62 = vpop.f32.mrf.mxu0 }
 0x10b   : > { %3344 = vst [vmem:[#allocation6_spill] sm:$0xff] %v3125_v62  ;;  %v3127_v63 = vpop.f32.mrf.mxu1 }
 0x10c   : > { %3345 = vst [vmem:[#allocation7_spill] sm:$0xff] %v3127_v63  ;;  %v3129_v0 = vpop.f32.mrf.mxu0 }
 0x10d   : > { %3346 = vst [vmem:[#allocation8_spill] sm:$0xff] %v3129_v0  ;;  %v3131_v1 = vpop.f32.mrf.mxu1  ;;  %v1093_v0 = vadd.f32 %v3023_v11, %v3021_v10 }
 0x10e   : > { %3347 = vst [vmem:[#allocation9_spill] sm:$0xff] %v3131_v1  ;;  %v3133_v2 = vpop.f32.mrf.mxu0 }
 0x10f   : > { %3348 = vst [vmem:[#allocation10_spill] sm:$0xff] %v3133_v2  ;;  %v3135_v3 = vpop.f32.mrf.mxu1 }
 0x110   : > { %3349 = vst [vmem:[#allocation11_spill] sm:$0xff] %v3135_v3  ;;  %v3137_v4 = vpop.f32.mrf.mxu0  ;;  %v3152_v3 = vld [vmem:[%s3337_s8] ss:$0 sm:$0xff] }
 0x111   : > { %3350 = vst [vmem:[#allocation12_spill] sm:$0xff] %v3137_v4  ;;  %v3139_v5 = vpop.f32.mrf.mxu1 }
 0x112   : > { %3351 = vst [vmem:[#allocation13_spill] sm:$0xff] %v3139_v5  ;;  %v3141_v6 = vpop.f32.mrf.mxu0 }
 0x113   : > { %3352 = vst [vmem:[#allocation14_spill] sm:$0xff] %v3141_v6  ;;  %v3144_v61 = vpop.f32.mrf.mxu1  ;;  %v1104_v6 = vadd.f32 %v3027_v13, %v3025_v12  ;;  %v2006_v12 = vld [vmem:[%s3159_s28 + $0x10] sm:$0xff] }
 0x114   : > { %3353 = vst [vmem:[#allocation15_spill] sm:$0xff] %v3144_v61  ;;  %v2591_v62 = vpop.f32.mrf.mxu0 }
 0x115   : > { %v1546_v1 = vadd.f32 %v2591_v62, %v1101_v7  ;;  %v2625_v63 = vpop.f32.mrf.mxu1  ;;  %v1096_v62 = vadd.f32 %v3031_v15, %v3029_v14  ;;  %v1109_v14 = vadd.f32 %v3039_v19, %v3037_v18  ;;  %v2004_v15 = vld [vmem:[%s3159_s28] sm:$0xff] }
 0x116   : > { %v1417_v4 = vpop.f32.mrf.mxu0 }
 0x117   : > { %v1903_v8 = vadd.f32 %v2625_v63, %v1546_v1  ;;  %v1544_v9 = vadd.f32 %v1417_v4, %v1093_v0  ;;  %v1774_v10 = vpop.f32.mrf.mxu1  ;;  %v1117_v1 = vadd.f32 %v3035_v17, %v3033_v16  ;;  %v1120_v16 = vadd.f32 %v3043_v21, %v3041_v20  ;;  %v2007_v17 = vld [vmem:[%s3159_s28 + $0x18] sm:$0xff] }
 0x118   : > { %v2592_v11 = vpop.f32.mrf.mxu0 }
 0x119   : > { %v1942_v7 = vadd.f32 %v3152_v3, %v1903_v8  ;;  %v1901_v61 = vadd.f32 %v1774_v10, %v1544_v9  ;;  %v1547_v5 = vadd.f32 %v2592_v11, %v1104_v6  ;;  %v2626_v2 = vpop.f32.mrf.mxu1 }
 0x11a   : > { %v1420_v13 = vpop.f32.mrf.mxu0 }
 0x11b   : > { %v1974_v60 = vmax.f32 %v1942_v7, 0.0  ;;  %v1940_v59 = vadd.f32 %v3152_v3, %v1901_v61  ;;  %v1904_v58 = vadd.f32 %v2626_v2, %v1547_v5  ;;  %v1545_v63 = vadd.f32 %v1420_v13, %v1096_v62  ;;  %v1777_v0 = vpop.f32.mrf.mxu1 }
 0x11c   : > { %v2595_v4 = vpop.f32.mrf.mxu0 }
 0x11d   : > { %v2038_v6 = vadd.f32 %v2006_v12, %v1974_v60  ;;  %v1972_v61 = vmax.f32 %v1940_v59, 0.0  ;;  %v1943_v2 = vadd.f32 %v3152_v3, %v1904_v58  ;;  %v1902_v5 = vadd.f32 %v1777_v0, %v1545_v63  ;;  %v2629_v8 = vpop.f32.mrf.mxu1  ;;  %v2005_v59 = vld [vmem:[%s3159_s28 + $0x8] sm:$0xff] }
 0x11e   : > { %v1550_v18 = vadd.f32 %v2595_v4, %v1117_v1  ;;  %v1433_v19 = vpop.f32.mrf.mxu0  ;;  %v1112_v58 = vadd.f32 %v3047_v23, %v3045_v22  ;;  %v1133_v1 = vadd.f32 %v3051_v25, %v3049_v24  ;;  %v2010_v22 = vld [vmem:[%s3159_s28 + $0x30] sm:$0xff] }
 0x11f   : > { %2070 = vst [vmem:[%s3173_s30 + $0x10] sm:$0xff] %v2038_v6  ;;  %v2036_v9 = vadd.f32 %v2004_v15, %v1972_v61  ;;  %v1975_v10 = vmax.f32 %v1943_v2, 0.0  ;;  %v1941_v11 = vadd.f32 %v3152_v3, %v1902_v5  ;;  %v1548_v60 = vadd.f32 %v1433_v19, %v1109_v14  ;;  %v1790_v62 = vpop.f32.mrf.mxu1 }
 0x120   : > { %v1907_v7 = vadd.f32 %v2629_v8, %v1550_v18  ;;  %v2596_v12 = vpop.f32.mrf.mxu0  ;;  %v2008_v8 = vld [vmem:[%s3159_s28 + $0x20] sm:$0xff] }
 0x121   : > { %2068 = vst [vmem:[%s3173_s30] sm:$0xff] %v2036_v9  ;;  %v2039_v20 = vadd.f32 %v2007_v17, %v1975_v10  ;;  %v1973_v21 = vmax.f32 %v1941_v11, 0.0  ;;  %v1905_v13 = vadd.f32 %v1790_v62, %v1548_v60  ;;  %v1551_v63 = vadd.f32 %v2596_v12, %v1120_v16  ;;  %v2630_v0 = vpop.f32.mrf.mxu1  ;;  %v2011_v60 = vld [vmem:[%s3159_s28 + $0x38] sm:$0xff] }
 0x122   : > { %v1946_v14 = vadd.f32 %v3152_v3, %v1907_v7  ;;  %v1436_v15 = vpop.f32.mrf.mxu0  ;;  %v1125_v9 = vadd.f32 %v3055_v27, %v3053_v26  ;;  %v1136_v10 = vadd.f32 %v3059_v29, %v3057_v28 }
 0x123   : > { %2071 = vst [vmem:[%s3173_s30 + $0x18] sm:$0xff] %v2039_v20  ;;  %v2037_v4 = vadd.f32 %v2005_v59, %v1973_v21  ;;  %v1944_v23 = vadd.f32 %v3152_v3, %v1905_v13  ;;  %v1908_v6 = vadd.f32 %v2630_v0, %v1551_v63  ;;  %v1549_v61 = vadd.f32 %v1436_v15, %v1112_v58  ;;  %v1793_v2 = vpop.f32.mrf.mxu1  ;;  %v2009_v13 = vld [vmem:[%s3159_s28 + $0x28] sm:$0xff]  ;;  %v2014_v15 = vld [vmem:[%s3159_s28 + $0x50] sm:$0xff] }
 0x124   : > { %v1978_v5 = vmax.f32 %v1946_v14, 0.0  ;;  %v2599_v17 = vpop.f32.mrf.mxu0  ;;  %v1128_v21 = vadd.f32 %v3063_v31, %v3061_v30  ;;  %v1149_v14 = vadd.f32 %v3067_v33, %v3065_v32  ;;  %v2012_v32 = vld [vmem:[%s3159_s28 + $0x40] sm:$0xff] }
 0x125   : > { %2069 = vst [vmem:[%s3173_s30 + $0x8] sm:$0xff] %v2037_v4  ;;  %v1976_v16 = vmax.f32 %v1944_v23, 0.0  ;;  %v1947_v24 = vadd.f32 %v3152_v3, %v1908_v6  ;;  %v1906_v25 = vadd.f32 %v1793_v2, %v1549_v61  ;;  %v1554_v18 = vadd.f32 %v2599_v17, %v1133_v1  ;;  %v2633_v19 = vpop.f32.mrf.mxu1 }
 0x126   : > { %v2042_v11 = vadd.f32 %v2010_v22, %v1978_v5  ;;  %v1449_v62 = vpop.f32.mrf.mxu0  ;;  %v1141_v2 = vadd.f32 %v3071_v35, %v3069_v34 }
 0x127   : > { %v2040_v58 = vadd.f32 %v2008_v8, %v1976_v16  ;;  %v1979_v59 = vmax.f32 %v1947_v24, 0.0  ;;  %v1945_v7 = vadd.f32 %v3152_v3, %v1906_v25  ;;  %v1911_v12 = vadd.f32 %v2633_v19, %v1554_v18  ;;  %v1806_v20 = vpop.f32.mrf.mxu1  ;;  %v2015_v19 = vld [vmem:[%s3159_s28 + $0x58] sm:$0xff] }
 0x128   : > { %2074 = vst [vmem:[%s3173_s30 + $0x30] sm:$0xff] %v2042_v11  ;;  %v1552_v26 = vadd.f32 %v1449_v62, %v1125_v9  ;;  %v2600_v27 = vpop.f32.mrf.mxu0  ;;  %v1152_v62 = vadd.f32 %v3075_v37, %v3073_v36 }
 0x129   : > { %2072 = vst [vmem:[%s3173_s30 + $0x20] sm:$0xff] %v2040_v58  ;;  %v2043_v28 = vadd.f32 %v2011_v60, %v1979_v59  ;;  %v1977_v29 = vmax.f32 %v1945_v7, 0.0  ;;  %v1950_v63 = vadd.f32 %v3152_v3, %v1911_v12  ;;  %v1555_v0 = vadd.f32 %v2600_v27, %v1136_v10  ;;  %v2634_v1 = vpop.f32.mrf.mxu1  ;;  %v2013_v7 = vld [vmem:[%s3159_s28 + $0x48] sm:$0xff] }
 0x12a   : > { %v1909_v4 = vadd.f32 %v1806_v20, %v1552_v26  ;;  %v1452_v22 = vpop.f32.mrf.mxu0  ;;  %v1144_v58 = vadd.f32 %v3079_v39, %v3077_v38 }
 0x12b   : > { %2075 = vst [vmem:[%s3173_s30 + $0x38] sm:$0xff] %v2043_v28  ;;  %v2041_v30 = vadd.f32 %v2009_v13, %v1977_v29  ;;  %v1982_v31 = vmax.f32 %v1950_v63, 0.0  ;;  %v1912_v23 = vadd.f32 %v2634_v1, %v1555_v0  ;;  %v1553_v6 = vadd.f32 %v1452_v22, %v1128_v21  ;;  %v1809_v61 = vpop.f32.mrf.mxu1  ;;  %v2018_v29 = vld [vmem:[%s3159_s28 + $0x70] sm:$0xff] }
 0x12c   : > { %v1948_v5 = vadd.f32 %v3152_v3, %v1909_v4  ;;  %v2603_v8 = vpop.f32.mrf.mxu0  ;;  %v1165_v28 = vadd.f32 %v3083_v41, %v3081_v40 }
 0x12d   : > { %2073 = vst [vmem:[%s3173_s30 + $0x28] sm:$0xff] %v2041_v30  ;;  %v2046_v17 = vadd.f32 %v2014_v15, %v1982_v31  ;;  %v1951_v33 = vadd.f32 %v3152_v3, %v1912_v23  ;;  %v1910_v16 = vadd.f32 %v1809_v61, %v1553_v6  ;;  %v1558_v24 = vadd.f32 %v2603_v8, %v1149_v14  ;;  %v2637_v25 = vpop.f32.mrf.mxu1  ;;  %v2016_v15 = vld [vmem:[%s3159_s28 + $0x60] sm:$0xff] }
 0x12e   : > { %v1980_v18 = vmax.f32 %v1948_v5, 0.0  ;;  %v1465_v9 = vpop.f32.mrf.mxu0  ;;  %v1157_v14 = vadd.f32 %v3087_v43, %v3085_v42  ;;  %v1168_v6 = vadd.f32 %v3091_v45, %v3089_v44  ;;  %v2019_v42 = vld [vmem:[%s3159_s28 + $0x78] sm:$0xff] }
 0x12f   : > { %2078 = vst [vmem:[%s3173_s30 + $0x50] sm:$0xff] %v2046_v17  ;;  %v1983_v10 = vmax.f32 %v1951_v33, 0.0  ;;  %v1949_v34 = vadd.f32 %v3152_v3, %v1910_v16  ;;  %v1915_v35 = vadd.f32 %v2637_v25, %v1558_v24  ;;  %v1556_v11 = vadd.f32 %v1465_v9, %v1141_v2  ;;  %v1822_v60 = vpop.f32.mrf.mxu1  ;;  %v2017_v16 = vld [vmem:[%s3159_s28 + $0x68] sm:$0xff] }
 0x130   : > { %v2044_v59 = vadd.f32 %v2012_v32, %v1980_v18  ;;  %v2604_v12 = vpop.f32.mrf.mxu0  ;;  %v1160_v9 = vadd.f32 %v3095_v47, %v3093_v46 }
 0x131   : > { %v2047_v20 = vadd.f32 %v2015_v19, %v1983_v10  ;;  %v1981_v21 = vmax.f32 %v1949_v34, 0.0  ;;  %v1954_v13 = vadd.f32 %v3152_v3, %v1915_v35  ;;  %v1913_v26 = vadd.f32 %v1822_v60, %v1556_v11  ;;  %v2638_v27 = vpop.f32.mrf.mxu1  ;;  %v2022_v35 = vld [vmem:[%s3159_s28 + $0x90] sm:$0xff] }
 0x132   : > { %2076 = vst [vmem:[%s3173_s30 + $0x40] sm:$0xff] %v2044_v59  ;;  %v1559_v36 = vadd.f32 %v2604_v12, %v1152_v62  ;;  %v1468_v37 = vpop.f32.mrf.mxu0  ;;  %v1181_v10 = vadd.f32 %v3099_v49, %v3097_v48  ;;  %v1173_v12 = vadd.f32 %v3103_v51, %v3101_v50 }
 0x133   : > { %2079 = vst [vmem:[%s3173_s30 + $0x58] sm:$0xff] %v2047_v20  ;;  %v2045_v38 = vadd.f32 %v2013_v7, %v1981_v21  ;;  %v1986_v39 = vmax.f32 %v1954_v13, 0.0  ;;  %v1952_v63 = vadd.f32 %v3152_v3, %v1913_v26  ;;  %v1557_v0 = vadd.f32 %v1468_v37, %v1144_v58  ;;  %v1825_v1 = vpop.f32.mrf.mxu1  ;;  %v2020_v20 = vld [vmem:[%s3159_s28 + $0x80] sm:$0xff] }
 0x134   : > { %v1916_v4 = vadd.f32 %v2638_v27, %v1559_v36  ;;  %v2607_v22 = vpop.f32.mrf.mxu0  ;;  %v1184_v27 = vadd.f32 %v3107_v53, %v3105_v52  ;;  %v2021_v52 = vld [vmem:[%s3159_s28 + $0x88] sm:$0xff] }
 0x135   : > { %2077 = vst [vmem:[%s3173_s30 + $0x48] sm:$0xff] %v2045_v38  ;;  %v2050_v40 = vadd.f32 %v2018_v29, %v1986_v39  ;;  %v1984_v41 = vmax.f32 %v1952_v63, 0.0  ;;  %v1914_v30 = vadd.f32 %v1825_v1, %v1557_v0  ;;  %v1562_v31 = vadd.f32 %v2607_v22, %v1165_v28  ;;  %v2641_v23 = vpop.f32.mrf.mxu1  ;;  %v2023_v28 = vld [vmem:[%s3159_s28 + $0x98] sm:$0xff] }
 0x136   : > { %v1955_v61 = vadd.f32 %v3152_v3, %v1916_v4  ;;  %v1481_v2 = vpop.f32.mrf.mxu0  ;;  %v1176_v63 = vadd.f32 %v3111_v55, %v3109_v54 }
 0x137   : > { %2082 = vst [vmem:[%s3173_s30 + $0x70] sm:$0xff] %v2050_v40  ;;  %v2048_v5 = vadd.f32 %v2016_v15, %v1984_v41  ;;  %v1953_v43 = vadd.f32 %v3152_v3, %v1914_v30  ;;  %v1919_v8 = vadd.f32 %v2641_v23, %v1562_v31  ;;  %v1560_v17 = vadd.f32 %v1481_v2, %v1157_v14  ;;  %v1838_v32 = vpop.f32.mrf.mxu1  ;;  %v2026_v41 = vld [vmem:[%s3159_s28 + $0xb0] sm:$0xff]  ;;  %v3354_v2 = vld [vmem:[#allocation2_spill] sm:$0xff] }
 0x138   : > { %v1987_v33 = vmax.f32 %v1955_v61, 0.0  ;;  %v2608_v24 = vpop.f32.mrf.mxu0  ;;  %v1197_v61 = vadd.f32 %v3115_v57, %v3113_v56 }
 0x139   : > { %2080 = vst [vmem:[%s3173_s30 + $0x60] sm:$0xff] %v2048_v5  ;;  %v1985_v25 = vmax.f32 %v1953_v43, 0.0  ;;  %v1958_v44 = vadd.f32 %v3152_v3, %v1919_v8  ;;  %v1917_v45 = vadd.f32 %v1838_v32, %v1560_v17  ;;  %v1563_v18 = vadd.f32 %v2608_v24, %v1168_v6  ;;  %v2642_v19 = vpop.f32.mrf.mxu1  ;;  %v3355_v5 = vld [vmem:[#allocation3_spill] sm:$0xff]  ;;  %v2024_v8 = vld [vmem:[%s3159_s28 + $0xa0] sm:$0xff] }
 0x13a   : > { %v2051_v34 = vadd.f32 %v2019_v42, %v1987_v33  ;;  %v1484_v11 = vpop.f32.mrf.mxu0  ;;  %v1189_v42 = vadd.f32 %v3355_v5, %v3354_v2 }
 0x13b   : > { %v2049_v60 = vadd.f32 %v2017_v16, %v1985_v25  ;;  %v1990_v62 = vmax.f32 %v1958_v44, 0.0  ;;  %v1956_v58 = vadd.f32 %v3152_v3, %v1917_v45  ;;  %v1920_v59 = vadd.f32 %v2642_v19, %v1563_v18  ;;  %v1841_v7 = vpop.f32.mrf.mxu1  ;;  %v3356_v44 = vld [vmem:[#allocation4_spill] sm:$0xff]  ;;  %v3357_v45 = vld [vmem:[#allocation5_spill] sm:$0xff] }
 0x13c   : > { %2083 = vst [vmem:[%s3173_s30 + $0x78] sm:$0xff] %v2051_v34  ;;  %v1561_v46 = vadd.f32 %v1484_v11, %v1160_v9  ;;  %v2611_v47 = vpop.f32.mrf.mxu0  ;;  %v1200_v18 = vadd.f32 %v3357_v45, %v3356_v44  ;;  %v2027_v19 = vld [vmem:[%s3159_s28 + $0xb8] sm:$0xff] }
 0x13d   : > { %2081 = vst [vmem:[%s3173_s30 + $0x68] sm:$0xff] %v2049_v60  ;;  %v2054_v48 = vadd.f32 %v2022_v35, %v1990_v62  ;;  %v1988_v49 = vmax.f32 %v1956_v58, 0.0  ;;  %v1959_v21 = vadd.f32 %v3152_v3, %v1920_v59  ;;  %v1566_v13 = vadd.f32 %v2611_v47, %v1181_v10  ;;  %v2645_v26 = vpop.f32.mrf.mxu1  ;;  %v3358_v60 = vld [vmem:[#allocation6_spill] sm:$0xff]  ;;  %v3359_v62 = vld [vmem:[#allocation7_spill] sm:$0xff] }
 0x13e   : > { %v1918_v29 = vadd.f32 %v1841_v7, %v1561_v46  ;;  %v1497_v36 = vpop.f32.mrf.mxu0  ;;  %v1192_v58 = vadd.f32 %v3359_v62, %v3358_v60  ;;  %v2025_v59 = vld [vmem:[%s3159_s28 + $0xa8] sm:$0xff] }
 0x13f   : > { %2086 = vst [vmem:[%s3173_s30 + $0x90] sm:$0xff] %v2054_v48  ;;  %v2052_v50 = vadd.f32 %v2020_v20, %v1988_v49  ;;  %v1991_v51 = vmax.f32 %v1959_v21, 0.0  ;;  %v1923_v37 = vadd.f32 %v2645_v26, %v1566_v13  ;;  %v1564_v38 = vadd.f32 %v1497_v36, %v1173_v12  ;;  %v1854_v39 = vpop.f32.mrf.mxu1  ;;  %v3360_v21 = vld [vmem:[#allocation8_spill] sm:$0xff]  ;;  %v3361_v13 = vld [vmem:[#allocation9_spill] sm:$0xff] }
 0x140   : > { %v1957_v0 = vadd.f32 %v3152_v3, %v1918_v29  ;;  %v2612_v1 = vpop.f32.mrf.mxu0  ;;  %v1213_v26 = vadd.f32 %v3361_v13, %v3360_v21  ;;  %v2030_v36 = vld [vmem:[%s3159_s28 + $0xd0] sm:$0xff] }
 0x141   : > { %2084 = vst [vmem:[%s3173_s30 + $0x80] sm:$0xff] %v2052_v50  ;;  %v2055_v14 = vadd.f32 %v2023_v28, %v1991_v51  ;;  %v1962_v53 = vadd.f32 %v3152_v3, %v1923_v37  ;;  %v1921_v15 = vadd.f32 %v1854_v39, %v1564_v38  ;;  %v1567_v4 = vadd.f32 %v2612_v1, %v1184_v27  ;;  %v2646_v22 = vpop.f32.mrf.mxu1 }
 0x142   : > { %v1989_v40 = vmax.f32 %v1957_v0, 0.0  ;;  %v1500_v30 = vpop.f32.mrf.mxu0 }
 0x143   : > { %2087 = vst [vmem:[%s3173_s30 + $0x98] sm:$0xff] %v2055_v14  ;;  %v1994_v31 = vmax.f32 %v1962_v53, 0.0  ;;  %v1960_v54 = vadd.f32 %v3152_v3, %v1921_v15  ;;  %v1924_v55 = vadd.f32 %v2646_v22, %v1567_v4  ;;  %v1565_v23 = vadd.f32 %v1500_v30, %v1176_v63  ;;  %v1857_v6 = vpop.f32.mrf.mxu1  ;;  %v2028_v63 = vld [vmem:[%s3159_s28 + $0xc0] sm:$0xff]  ;;  %v3363_v22 = vld [vmem:[#allocation11_spill] sm:$0xff]  ;;  %v3365_v30 = vld [vmem:[#allocation13_spill] sm:$0xff] }
 0x144   : > { %v2053_v43 = vadd.f32 %v2021_v52, %v1989_v40  ;;  %v2615_v17 = vpop.f32.mrf.mxu0  ;;  %v3362_v4 = vld [vmem:[#allocation10_spill] sm:$0xff] }
 0x145   : > { %v2058_v32 = vadd.f32 %v2026_v41, %v1994_v31  ;;  %v1992_v33 = vmax.f32 %v1960_v54, 0.0  ;;  %v1963_v16 = vadd.f32 %v3152_v3, %v1924_v55  ;;  %v1922_v24 = vadd.f32 %v1857_v6, %v1565_v23  ;;  %v2649_v25 = vpop.f32.mrf.mxu1  ;;  %v3364_v41 = vld [vmem:[#allocation12_spill] sm:$0xff]  ;;  %v2031_v55 = vld [vmem:[%s3159_s28 + $0xd8] sm:$0xff] }
 0x146   : > { %2085 = vst [vmem:[%s3173_s30 + $0x88] sm:$0xff] %v2053_v43  ;;  %v1570_v56 = vadd.f32 %v2615_v17, %v1197_v61  ;;  %v1513_v57 = vpop.f32.mrf.mxu0  ;;  %v1205_v40 = vadd.f32 %v3363_v22, %v3362_v4  ;;  %v1216_v31 = vadd.f32 %v3365_v30, %v3364_v41  ;;  %v3366_v43 = vld [vmem:[#allocation14_spill] sm:$0xff] }
 0x147   : > { %2090 = vst [vmem:[%s3173_s30 + $0xb0] sm:$0xff] %v2058_v32  ;;  %v2056_v9 = vadd.f32 %v2024_v8, %v1992_v33  ;;  %v1995_v10 = vmax.f32 %v1963_v16, 0.0  ;;  %v1961_v34 = vadd.f32 %v3152_v3, %v1922_v24  ;;  %v1568_v35 = vadd.f32 %v1513_v57, %v1189_v42  ;;  %v1870_v11 = vpop.f32.mrf.mxu1  ;;  %v3367_v8 = vld [vmem:[#allocation15_spill] sm:$0xff] }
 0x148   : > { %v1927_v7 = vadd.f32 %v2649_v25, %v1570_v56  ;;  %v2616_v12 = vpop.f32.mrf.mxu0  ;;  %v1208_v17 = vadd.f32 %v3367_v8, %v3366_v43  ;;  %v2029_v32 = vld [vmem:[%s3159_s28 + $0xc8] sm:$0xff] }
 0x149   : > { %2088 = vst [vmem:[%s3173_s30 + $0xa0] sm:$0xff] %v2056_v9  ;;  %v2059_v20 = vadd.f32 %v2027_v19, %v1995_v10  ;;  %v1993_v46 = vmax.f32 %v1961_v34, 0.0  ;;  %v1925_v47 = vadd.f32 %v1870_v11, %v1568_v35  ;;  %v1571_v48 = vadd.f32 %v2616_v12, %v1200_v18  ;;  %v2650_v49 = vpop.f32.mrf.mxu1  ;;  %v2034_v19 = vld [vmem:[%s3159_s28 + $0xf0] sm:$0xff] }
 0x14a   : > { %v1966_v27 = vadd.f32 %v3152_v3, %v1927_v7  ;;  %v1516_v28 = vpop.f32.mrf.mxu0 }
 0x14b   : > { %2091 = vst [vmem:[%s3173_s30 + $0xb8] sm:$0xff] %v2059_v20  ;;  %v2057_v29 = vadd.f32 %v2025_v59, %v1993_v46  ;;  %v1964_v50 = vadd.f32 %v3152_v3, %v1925_v47  ;;  %v1928_v51 = vadd.f32 %v2650_v49, %v1571_v48  ;;  %v1569_v37 = vadd.f32 %v1516_v28, %v1192_v58  ;;  %v1873_v38 = vpop.f32.mrf.mxu1  ;;  %v2032_v58 = vld [vmem:[%s3159_s28 + $0xe0] sm:$0xff]  ;;  %v2035_v20 = vld [vmem:[%s3159_s28 + $0xf8] sm:$0xff]  ;;  %v2033_v49 = vld [vmem:[%s3159_s28 + $0xe8] sm:$0xff] }
 0x14c   : > { %v1998_v39 = vmax.f32 %v1966_v27, 0.0  ;;  %v2619_v0 = vpop.f32.mrf.mxu0 }
 0x14d   : > { %2089 = vst [vmem:[%s3173_s30 + $0xa8] sm:$0xff] %v2057_v29  ;;  %v1996_v1 = vmax.f32 %v1964_v50, 0.0  ;;  %v1967_v14 = vadd.f32 %v3152_v3, %v1928_v51  ;;  %v1926_v52 = vadd.f32 %v1873_v38, %v1569_v37  ;;  %v1574_v53 = vadd.f32 %v2619_v0, %v1213_v26  ;;  %v2653_v15 = vpop.f32.mrf.mxu1 }
 0x14e   : > { %v2062_v54 = vadd.f32 %v2030_v36, %v1998_v39  ;;  %v1529_v23 = vpop.f32.mrf.mxu0 }
 0x14f   : > { %v2060_v6 = vadd.f32 %v2028_v63, %v1996_v1  ;;  %v1999_v61 = vmax.f32 %v1967_v14, 0.0  ;;  %v1965_v2 = vadd.f32 %v3152_v3, %v1926_v52  ;;  %v1931_v5 = vadd.f32 %v2653_v15, %v1574_v53  ;;  %v1886_v42 = vpop.f32.mrf.mxu1 }
 0x150   : > { %2094 = vst [vmem:[%s3173_s30 + $0xd0] sm:$0xff] %v2062_v54  ;;  %v1572_v33 = vadd.f32 %v1529_v23, %v1205_v40  ;;  %v2620_v16 = vpop.f32.mrf.mxu0 }
 0x151   : > { %2092 = vst [vmem:[%s3173_s30 + $0xc0] sm:$0xff] %v2060_v6  ;;  %v2063_v24 = vadd.f32 %v2031_v55, %v1999_v61  ;;  %v1997_v25 = vmax.f32 %v1965_v2, 0.0  ;;  %v1970_v44 = vadd.f32 %v3152_v3, %v1931_v5  ;;  %v1575_v45 = vadd.f32 %v2620_v16, %v1216_v31  ;;  %v2654_v18 = vpop.f32.mrf.mxu1 }
 0x152   : > { %v1929_v56 = vadd.f32 %v1886_v42, %v1572_v33  ;;  %v1532_v57 = vpop.f32.mrf.mxu0 }
 0x153   : > { %2095 = vst [vmem:[%s3173_s30 + $0xd8] sm:$0xff] %v2063_v24  ;;  %v2061_v9 = vadd.f32 %v2029_v32, %v1997_v25  ;;  %v2002_v10 = vmax.f32 %v1970_v44, 0.0  ;;  %v1932_v34 = vadd.f32 %v2654_v18, %v1575_v45  ;;  %v1573_v35 = vadd.f32 %v1532_v57, %v1208_v17  ;;  %v1889_v60 = vpop.f32.mrf.mxu1 }
 0x154   : > { %v1968_v11 = vadd.f32 %v3152_v3, %v1929_v56 }
 0x155   : > { %2093 = vst [vmem:[%s3173_s30 + $0xc8] sm:$0xff] %v2061_v9  ;;  %v2066_v62 = vadd.f32 %v2034_v19, %v2002_v10  ;;  %v1971_v59 = vadd.f32 %v3152_v3, %v1932_v34  ;;  %v1930_v7 = vadd.f32 %v1889_v60, %v1573_v35 }
 0x156   : > { %v2000_v12 = vmax.f32 %v1968_v11, 0.0 }
 0x157   : > { %2098 = vst [vmem:[%s3173_s30 + $0xf0] sm:$0xff] %v2066_v62  ;;  %v2003_v46 = vmax.f32 %v1971_v59, 0.0  ;;  %v1969_v47 = vadd.f32 %v3152_v3, %v1930_v7 }
 0x158   : > { %v2064_v48 = vadd.f32 %v2032_v58, %v2000_v12 }
 0x159   : > { %v2067_v21 = vadd.f32 %v2035_v20, %v2003_v46  ;;  %v2001_v13 = vmax.f32 %v1969_v47, 0.0 }
 0x15a   : > { %2096 = vst [vmem:[%s3173_s30 + $0xe0] sm:$0xff] %v2064_v48 }
 0x15b   : > { %2099 = vst [vmem:[%s3173_s30 + $0xf8] sm:$0xff] %v2067_v21  ;;  %v2065_v26 = vadd.f32 %v2033_v49, %v2001_v13 }
 0x15d   : > { %2097 = vst [vmem:[%s3173_s30 + $0xe8] sm:$0xff] %v2065_v26 }
 0x15e PF: > { %s20_s15 = sadd.s32 1, %s2769_s15   ;;  %s3368_s13 = smov %s2765_s14 }
 0x15f   : > { %p17_p5 = scmp.ge.s32.totalorder %s20_s15, 4   ;;  %s3369_s14 = smov %s3371_s16 }
 0x161   :  { %19 = sbr.rel (!%p17_p5) target bundleno = 2 (0x2), region = 117 }

</bundles_post_ra>
